<compile_context>
chip_gen: v7x
topology: tpu7x:2x2x1
jax: 0.10.0
libtpu: 0.0.40
codegen_flags: <defaults>
</compile_context>

<pallas_src>
import numpy as np
import jax
import jax.numpy as jnp
from jax.experimental import pallas as pl
from jax.experimental.pallas import tpu as pltpu


# ----------------------------------------------------------------------------
# Static geometry: 16x16 -> 8x8 (32ch) -> 4x4 (64ch) -> 8x8 (32ch) -> 16x16 (1ch)
# ----------------------------------------------------------------------------
# Sub-pixel ConvTranspose tap table for k=3, stride=2, pad=1, output_pad=1:
#   out[.., 2a+py, 2b+px] += w[.., ky, kx] * x[.., a+sy, b+sx]   (zero if out of range)
_CT_TAPS = {
    (0, 0): [(1, 1, 0, 0)],
    (0, 1): [(1, 0, 0, 1), (1, 2, 0, 0)],
    (1, 0): [(0, 1, 1, 0), (2, 1, 0, 0)],
    (1, 1): [(0, 0, 1, 1), (0, 2, 1, 0), (2, 0, 0, 1), (2, 2, 0, 0)],
}
_PLANES = ((0, 0), (0, 1), (1, 0), (1, 1))   # output parity plane order (py, px)
_SHIFTS = ((0, 0), (0, 1), (1, 0), (1, 1))   # contraction-block shift order (sy, sx)


def _build_selection_constants(n):
    """0/1 selection matrices turning spatial gathers into MXU matmuls (host precompute).

    Block-diagonal over the batch because the kernel keeps activations as
    [channels, batch*spatial] and the whole batch must sit in one invocation anyway so that
    train-mode BatchNorm statistics are exact.
    """
    m64, m16 = n * 64, n * 16

    # s2[t]: [N*64, N*16] gather for tap t=(dy,dx) of the 3x3/stride-2/pad-1 conv, 8x8 -> 4x4.
    s2 = np.zeros((9, m64, m16), np.float32)
    for dy in range(3):
        for dx in range(3):
            t = dy * 3 + dx
            for b in range(n):
                for ho in range(4):
                    for wo in range(4):
                        h, w = 2 * ho + dy - 1, 2 * wo + dx - 1
                        if 0 <= h < 8 and 0 <= w < 8:
                            s2[t, b * 64 + h * 8 + w, b * 16 + ho * 4 + wo] = 1.0

    # s3[j]: [N*16, N*16] unit shifts (0,1),(1,0),(1,1) on the 4x4 grid (zero past the edge).
    s3 = np.zeros((3, m16, m16), np.float32)
    for j, (sy, sx) in enumerate(_SHIFTS[1:]):
        for b in range(n):
            for a in range(4):
                for c in range(4):
                    aa, cc = a + sy, c + sx
                    if aa < 4 and cc < 4:
                        s3[j, b * 16 + aa * 4 + cc, b * 16 + a * 4 + c] = 1.0

    # t4[s]: [4*N*16, N*64] from the parity-plane-stacked 4x4 representation of an 8x8
    #        activation to its (sy,sx)-shifted 8x8 view (zero past the edge).
    t4 = np.zeros((4, 4 * m16, m64), np.float32)
    for s, (sy, sx) in enumerate(_SHIFTS):
        for q, (py, px) in enumerate(_PLANES):
            for b in range(n):
                for y in range(8):
                    for x in range(8):
                        yy, xx = y + sy, x + sx
                        if yy < 8 and xx < 8 and yy % 2 == py and xx % 2 == px:
                            t4[s, q * m16 + b * 16 + (yy // 2) * 4 + (xx // 2),
                               b * 64 + y * 8 + x] = 1.0
    return s2, s3, t4


# ----------------------------------------------------------------------------
# The single fused Pallas kernel
# ----------------------------------------------------------------------------
def _autoencoder_kernel(p1_ref, w1_ref, s2_ref, w2c_ref, b2_ref, s3_ref,
                        wt1_ref, t4_ref, wf_ref, bt2_ref, o_ref):
    f32 = jnp.float32
    eps = 1e-5

    def dot(a, b):
        return jnp.dot(a, b, preferred_element_type=f32)

    def bn_tanh(x):
        # BatchNorm2d (train-mode stats, gamma=1, beta=0) + Tanh.  Rows are channels and the
        # lane axis covers exactly (batch x spatial), so row stats == BN batch stats.
        mean = jnp.mean(x, axis=1, keepdims=True)
        var = jnp.mean(jnp.square(x - mean), axis=1, keepdims=True)
        return jnp.tanh((x - mean) * jax.lax.rsqrt(var + eps))

    # ---- encoder: Conv(1->32, s2, p1) [bias cancelled by BN] + BN + Tanh
    a1 = bn_tanh(dot(w1_ref[...], p1_ref[...]))                               # [32, N*64]

    # ---- encoder: Conv(32->64, s2, p1) + bias + Tanh
    # in-kernel im2col: 9 tap gathers stacked along the contraction axis -> one K=288 GEMM.
    patches = jnp.concatenate([dot(a1, s2_ref[t]) for t in range(9)], axis=0)  # [288, N*16]
    a2 = jnp.tanh(dot(w2c_ref[...], patches) + b2_ref[...])                    # [64, N*16]

    # ---- decoder: ConvT(64->32, s2, p1, op1) [bias cancelled by BN] + BN + Tanh
    # sub-pixel decomposition: stack the 4 shifted copies of a2 along the contraction axis and
    # compute all 4 output parity planes with ONE K=256 GEMM.
    shifted = jnp.concatenate(
        [a2] + [dot(a2, s3_ref[j]) for j in range(3)], axis=0)                 # [256, N*16]
    pre3 = dot(wt1_ref[...], shifted)                                          # [128, N*16]
    # parity planes: sublanes -> lanes, so BN row-stats cover the full (batch x 8 x 8) extent
    # and downstream gathers become K=4*N*16 GEMMs instead of 16 tiny ones.
    pre3 = jnp.concatenate([pre3[q * 32:(q + 1) * 32, :] for q in range(4)], axis=1)
    a3 = bn_tanh(pre3)                                                         # [32, 4*N*16]

    # ---- decoder: ConvT(32->1, s2, p1, op1) + bias + Tanh
    # 4 shifted 8x8 views gathered from the plane-stacked a3, stacked along the contraction
    # axis, then a single [4, 128] x [128, N*64] GEMM producing all 4 output parity planes.
    stack4 = jnp.concatenate([dot(a3, t4_ref[s]) for s in range(4)], axis=0)   # [128, N*64]
    out = jnp.tanh(dot(wf_ref[...], stack4) + bt2_ref[...])                    # [4, N*64]
    o_ref[...] = out.astype(o_ref.dtype)


# ----------------------------------------------------------------------------
# Forward pass (matches AutoEncoder.forward)
# ----------------------------------------------------------------------------
def autoencoder_forward(x_nchw, kp):
    n = x_nchw.shape[0]
    m64 = n * 64

    # host-side im2col for the first conv only (single input channel): [9, N*64]
    xs = x_nchw[:, 0]                                       # [N, 16, 16]
    xp = jnp.pad(xs, ((0, 0), (1, 1), (1, 1)))              # [N, 18, 18]
    p1 = jnp.stack([xp[:, dy:dy + 16:2, dx:dx + 16:2].reshape(n * 64)
                    for dy in range(3) for dx in range(3)], axis=0)

    out = pl.pallas_call(
        _autoencoder_kernel,
        out_shape=jax.ShapeDtypeStruct((4, m64), jnp.float32),
        compiler_params=pltpu.CompilerParams(vmem_limit_bytes=32 * 1024 * 1024),
    )(p1, kp["w1"], kp["s2"], kp["w2cat"], kp["b2"], kp["s3"],
      kp["wt1big"], kp["t4"], kp["wfinal"], kp["bt2"])

    # Un-interleave the 4 output parity planes: [4, N*64] -> [N, 1, 16, 16].
    y = out.reshape(2, 2, n, 8, 8)                          # (py, px, n, y, x)
    y = jnp.transpose(y, (2, 3, 0, 4, 1)).reshape(n, 16, 16)
    return y[:, None, :, :]


# ----------------------------------------------------------------------------
# Parameter init (PyTorch-like uniform(-1/sqrt(fan_in), ...)) + one-time weight repacking
# ----------------------------------------------------------------------------
def init_params(key):
    def uinit(k, shape, fan_in):
        bound = 1.0 / float(np.sqrt(fan_in))
        return jax.random.uniform(k, shape, jnp.float32, -bound, bound)

    ks = jax.random.split(key, 8)
    return {
        "w1": uinit(ks[0], (32, 1, 3, 3), 9),          # Conv2d(1, 32)
        "b1": uinit(ks[1], (32,), 9),
        "w2": uinit(ks[2], (64, 32, 3, 3), 32 * 9),    # Conv2d(32, 64)
        "b2": uinit(ks[3], (64,), 32 * 9),
        "wt1": uinit(ks[4], (64, 32, 3, 3), 32 * 9),   # ConvTranspose2d(64, 32)
        "bt1": uinit(ks[5], (32,), 32 * 9),
        "wt2": uinit(ks[6], (32, 1, 3, 3), 9),         # ConvTranspose2d(32, 1)
        "bt2": uinit(ks[7], (1,), 9),
    }


def prepare_kernel_params(params, n_batch):
    """One-time weight repacking + selection-matrix constants (host-side numpy)."""
    s2, s3, t4 = _build_selection_constants(n_batch)

    w1 = np.asarray(params["w1"], np.float32).reshape(32, 9)             # [co, tap]

    w2 = np.asarray(params["w2"], np.float32)                            # [co=64, ci=32, 3, 3]
    w2cat = np.transpose(w2, (0, 2, 3, 1)).reshape(64, 9 * 32)           # [co, tap*32+ci]

    wt1 = np.asarray(params["wt1"], np.float32)                          # [ci=64, co=32, 3, 3]
    wt1_big = np.zeros((4 * 32, 4 * 64), np.float32)                     # [plane*32+co, shift*64+ci]
    for q, plane in enumerate(_PLANES):
        for ky, kx, sy, sx in _CT_TAPS[plane]:
            s = sy * 2 + sx
            wt1_big[q * 32:(q + 1) * 32, s * 64:(s + 1) * 64] = wt1[:, :, ky, kx].T

    wt2 = np.asarray(params["wt2"], np.float32)                          # [ci=32, co=1, 3, 3]
    w_final = np.zeros((4, 4 * 32), np.float32)                          # [plane, shift*32+ci]
    for r, plane in enumerate(_PLANES):
        for ky, kx, sy, sx in _CT_TAPS[plane]:
            s = sy * 2 + sx
            w_final[r, s * 32:(s + 1) * 32] = wt2[:, 0, ky, kx]

    # b1 / bt1 intentionally dropped: they feed a train-mode BatchNorm (gamma=1, beta=0), so the
    # per-channel constant is cancelled exactly by the mean subtraction.
    return {
        "w1": jnp.asarray(w1), "s2": jnp.asarray(s2), "w2cat": jnp.asarray(w2cat),
        "b2": jnp.asarray(np.asarray(params["b2"], np.float32).reshape(64, 1)),
        "s3": jnp.asarray(s3), "wt1big": jnp.asarray(wt1_big), "t4": jnp.asarray(t4),
        "wfinal": jnp.asarray(w_final),
        "bt2": jnp.asarray(np.asarray(params["bt2"], np.float32).reshape(1, 1)),
    }


# ----------------------------------------------------------------------------
# Pure-numpy float64 reference (op-by-op transcription of the PyTorch module)
# ----------------------------------------------------------------------------
def _reference_forward(x, params):
    x = np.asarray(x, np.float64)
    p = {k: np.asarray(v, np.float64) for k, v in params.items()}
    eps = 1e-5

    def conv_s2p1(x, w, b):                 # Conv2d(k=3, stride=2, padding=1)
        n, _, h, _ = x.shape
        co, ho = w.shape[0], h // 2
        xp = np.pad(x, ((0, 0), (0, 0), (1, 1), (1, 1)))
        out = np.zeros((n, co, ho, ho))
        for ky in range(3):
            for kx in range(3):
                patch = xp[:, :, ky:ky + 2 * ho:2, kx:kx + 2 * ho:2]
                out += np.einsum("oc,nchw->nohw", w[:, :, ky, kx], patch)
        return out + b[None, :, None, None]

    def convt_s2p1op1(x, w, b):             # ConvTranspose2d(k=3, s=2, p=1, output_padding=1)
        n, _, h, _ = x.shape
        co, ho = w.shape[1], 2 * h
        out = np.zeros((n, co, ho, ho))
        for ky in range(3):
            for kx in range(3):
                contrib = np.einsum("co,nchw->nohw", w[:, :, ky, kx], x)
                for i in range(h):
                    yy = 2 * i - 1 + ky
                    if not 0 <= yy < ho:
                        continue
                    for j in range(h):
                        xx = 2 * j - 1 + kx
                        if 0 <= xx < ho:
                            out[:, :, yy, xx] += contrib[:, :, i, j]
        return out + b[None, :, None, None]

    def bn_tanh(x):                         # BatchNorm2d train mode (gamma=1, beta=0) + Tanh
        mean = x.mean(axis=(0, 2, 3), keepdims=True)
        var = x.var(axis=(0, 2, 3), keepdims=True)
        return np.tanh((x - mean) / np.sqrt(var + eps))

    h = bn_tanh(conv_s2p1(x, p["w1"], p["b1"]))
    h = np.tanh(conv_s2p1(h, p["w2"], p["b2"]))
    h = bn_tanh(convt_s2p1op1(h, p["wt1"], p["bt1"]))
    return np.tanh(convt_s2p1op1(h, p["wt2"], p["bt2"]))


if __name__ == "__main__":
    key = jax.random.PRNGKey(0)
    pkey, xkey = jax.random.split(key)
    params = init_params(pkey)

    n_batch = 2
    kparams = prepare_kernel_params(params, n_batch)

    # PyTorch-convention input: NCHW, 1 channel, 16x16
    x = jax.random.normal(xkey, (n_batch, 1, 16, 16), jnp.float32)

    fwd = jax.jit(autoencoder_forward)
    out = jax.block_until_ready(fwd(x, kparams))

    assert out.shape == (n_batch, 1, 16, 16) and out.dtype == jnp.float32
    out_np = np.asarray(out, np.float64)
    assert np.all(np.isfinite(out_np))

    ref = _reference_forward(np.asarray(x), params)
    assert np.allclose(out_np, ref, atol=2e-2), (
        "max abs err %.3e" % float(np.max(np.abs(out_np - ref))))

    print("KERNEL_OK")
</pallas_src>

<mosaic_0001>
module attributes {stable_mosaic.version = 11 : i64} {
  func.func @_autoencoder_kernel(%arg0: memref<9x128xf32, #tpu.memory_space<vmem>>, %arg1: memref<32x9xf32, #tpu.memory_space<vmem>>, %arg2: memref<9x128x32xf32, #tpu.memory_space<vmem>>, %arg3: memref<64x288xf32, #tpu.memory_space<vmem>>, %arg4: memref<64x1xf32, #tpu.memory_space<vmem>>, %arg5: memref<3x32x32xf32, #tpu.memory_space<vmem>>, %arg6: memref<128x256xf32, #tpu.memory_space<vmem>>, %arg7: memref<4x128x128xf32, #tpu.memory_space<vmem>>, %arg8: memref<4x128xf32, #tpu.memory_space<vmem>>, %arg9: memref<1x1xf32, #tpu.memory_space<vmem>>, %arg10: memref<4x128xf32, #tpu.memory_space<vmem>>) attributes {dimension_semantics = [], scalar_prefetch = 0 : i64, scratch_operands = 0 : i64, tpu.core_type = #tpu.core_type<tc>} {
    %c0 = arith.constant 0 : index
    %c0_0 = arith.constant 0 : index
    %0 = vector.load %arg1[%c0, %c0_0] : memref<32x9xf32, #tpu.memory_space<vmem>>, vector<32x9xf32>
    %c0_1 = arith.constant 0 : index
    %c0_2 = arith.constant 0 : index
    %1 = vector.load %arg0[%c0_1, %c0_2] : memref<9x128xf32, #tpu.memory_space<vmem>>, vector<9x128xf32>
    %cst = arith.constant dense<0.000000e+00> : vector<32x128xf32>
    %2 = tpu.matmul %0, %1, %cst {dimension_numbers = #tpu.dot_dimension_numbers<[1], [0], [0], [1], [0, 0, 1, 1], [], []>} : vector<32x9xf32>, vector<9x128xf32>, vector<32x128xf32> -> vector<32x128xf32>
    %cst_3 = arith.constant dense<0.000000e+00> : vector<32xf32>
    %3 = vector.multi_reduction <add>, %2, %cst_3 [1] : vector<32x128xf32> to vector<32xf32>
    %4 = vector.shape_cast %3 : vector<32xf32> to vector<32x1xf32>
    %cst_4 = arith.constant 1.280000e+02 : f32
    %5 = vector.broadcast %cst_4 : f32 to vector<32x1xf32>
    %6 = arith.divf %4, %5 : vector<32x1xf32>
    %7 = vector.broadcast %6 : vector<32x1xf32> to vector<32x128xf32>
    %8 = arith.subf %2, %7 : vector<32x128xf32>
    %9 = arith.mulf %8, %8 : vector<32x128xf32>
    %cst_5 = arith.constant dense<0.000000e+00> : vector<32xf32>
    %10 = vector.multi_reduction <add>, %9, %cst_5 [1] : vector<32x128xf32> to vector<32xf32>
    %11 = vector.shape_cast %10 : vector<32xf32> to vector<32x1xf32>
    %cst_6 = arith.constant 1.280000e+02 : f32
    %12 = vector.broadcast %cst_6 : f32 to vector<32x1xf32>
    %13 = arith.divf %11, %12 : vector<32x1xf32>
    %14 = vector.broadcast %6 : vector<32x1xf32> to vector<32x128xf32>
    %15 = arith.subf %2, %14 : vector<32x128xf32>
    %cst_7 = arith.constant 9.99999974E-6 : f32
    %16 = vector.broadcast %cst_7 : f32 to vector<32x1xf32>
    %17 = arith.addf %13, %16 : vector<32x1xf32>
    %18 = math.rsqrt %17 : vector<32x1xf32>
    %19 = vector.broadcast %18 : vector<32x1xf32> to vector<32x128xf32>
    %20 = arith.mulf %15, %19 : vector<32x128xf32>
    %21 = math.tanh %20 : vector<32x128xf32>
    %c0_8 = arith.constant 0 : index
    %c0_9 = arith.constant 0 : index
    %c0_10 = arith.constant 0 : index
    %22 = vector.load %arg2[%c0_8, %c0_9, %c0_10] : memref<9x128x32xf32, #tpu.memory_space<vmem>>, vector<1x128x32xf32>
    %23 = vector.shape_cast %22 : vector<1x128x32xf32> to vector<128x32xf32>
    %cst_11 = arith.constant dense<0.000000e+00> : vector<32x32xf32>
    %24 = tpu.matmul %21, %23, %cst_11 {dimension_numbers = #tpu.dot_dimension_numbers<[1], [0], [0], [1], [0, 0, 1, 1], [], []>} : vector<32x128xf32>, vector<128x32xf32>, vector<32x32xf32> -> vector<32x32xf32>
    %c1 = arith.constant 1 : index
    %c0_12 = arith.constant 0 : index
    %c0_13 = arith.constant 0 : index
    %25 = vector.load %arg2[%c1, %c0_12, %c0_13] : memref<9x128x32xf32, #tpu.memory_space<vmem>>, vector<1x128x32xf32>
    %26 = vector.shape_cast %25 : vector<1x128x32xf32> to vector<128x32xf32>
    %cst_14 = arith.constant dense<0.000000e+00> : vector<32x32xf32>
    %27 = tpu.matmul %21, %26, %cst_14 {dimension_numbers = #tpu.dot_dimension_numbers<[1], [0], [0], [1], [0, 0, 1, 1], [], []>} : vector<32x128xf32>, vector<128x32xf32>, vector<32x32xf32> -> vector<32x32xf32>
    %c2 = arith.constant 2 : index
    %c0_15 = arith.constant 0 : index
    %c0_16 = arith.constant 0 : index
    %28 = vector.load %arg2[%c2, %c0_15, %c0_16] : memref<9x128x32xf32, #tpu.memory_space<vmem>>, vector<1x128x32xf32>
    %29 = vector.shape_cast %28 : vector<1x128x32xf32> to vector<128x32xf32>
    %cst_17 = arith.constant dense<0.000000e+00> : vector<32x32xf32>
    %30 = tpu.matmul %21, %29, %cst_17 {dimension_numbers = #tpu.dot_dimension_numbers<[1], [0], [0], [1], [0, 0, 1, 1], [], []>} : vector<32x128xf32>, vector<128x32xf32>, vector<32x32xf32> -> vector<32x32xf32>
    %c3 = arith.constant 3 : index
    %c0_18 = arith.constant 0 : index
    %c0_19 = arith.constant 0 : index
    %31 = vector.load %arg2[%c3, %c0_18, %c0_19] : memref<9x128x32xf32, #tpu.memory_space<vmem>>, vector<1x128x32xf32>
    %32 = vector.shape_cast %31 : vector<1x128x32xf32> to vector<128x32xf32>
    %cst_20 = arith.constant dense<0.000000e+00> : vector<32x32xf32>
    %33 = tpu.matmul %21, %32, %cst_20 {dimension_numbers = #tpu.dot_dimension_numbers<[1], [0], [0], [1], [0, 0, 1, 1], [], []>} : vector<32x128xf32>, vector<128x32xf32>, vector<32x32xf32> -> vector<32x32xf32>
    %c4 = arith.constant 4 : index
    %c0_21 = arith.constant 0 : index
    %c0_22 = arith.constant 0 : index
    %34 = vector.load %arg2[%c4, %c0_21, %c0_22] : memref<9x128x32xf32, #tpu.memory_space<vmem>>, vector<1x128x32xf32>
    %35 = vector.shape_cast %34 : vector<1x128x32xf32> to vector<128x32xf32>
    %cst_23 = arith.constant dense<0.000000e+00> : vector<32x32xf32>
    %36 = tpu.matmul %21, %35, %cst_23 {dimension_numbers = #tpu.dot_dimension_numbers<[1], [0], [0], [1], [0, 0, 1, 1], [], []>} : vector<32x128xf32>, vector<128x32xf32>, vector<32x32xf32> -> vector<32x32xf32>
    %c5 = arith.constant 5 : index
    %c0_24 = arith.constant 0 : index
    %c0_25 = arith.constant 0 : index
    %37 = vector.load %arg2[%c5, %c0_24, %c0_25] : memref<9x128x32xf32, #tpu.memory_space<vmem>>, vector<1x128x32xf32>
    %38 = vector.shape_cast %37 : vector<1x128x32xf32> to vector<128x32xf32>
    %cst_26 = arith.constant dense<0.000000e+00> : vector<32x32xf32>
    %39 = tpu.matmul %21, %38, %cst_26 {dimension_numbers = #tpu.dot_dimension_numbers<[1], [0], [0], [1], [0, 0, 1, 1], [], []>} : vector<32x128xf32>, vector<128x32xf32>, vector<32x32xf32> -> vector<32x32xf32>
    %c6 = arith.constant 6 : index
    %c0_27 = arith.constant 0 : index
    %c0_28 = arith.constant 0 : index
    %40 = vector.load %arg2[%c6, %c0_27, %c0_28] : memref<9x128x32xf32, #tpu.memory_space<vmem>>, vector<1x128x32xf32>
    %41 = vector.shape_cast %40 : vector<1x128x32xf32> to vector<128x32xf32>
    %cst_29 = arith.constant dense<0.000000e+00> : vector<32x32xf32>
    %42 = tpu.matmul %21, %41, %cst_29 {dimension_numbers = #tpu.dot_dimension_numbers<[1], [0], [0], [1], [0, 0, 1, 1], [], []>} : vector<32x128xf32>, vector<128x32xf32>, vector<32x32xf32> -> vector<32x32xf32>
    %c7 = arith.constant 7 : index
    %c0_30 = arith.constant 0 : index
    %c0_31 = arith.constant 0 : index
    %43 = vector.load %arg2[%c7, %c0_30, %c0_31] : memref<9x128x32xf32, #tpu.memory_space<vmem>>, vector<1x128x32xf32>
    %44 = vector.shape_cast %43 : vector<1x128x32xf32> to vector<128x32xf32>
    %cst_32 = arith.constant dense<0.000000e+00> : vector<32x32xf32>
    %45 = tpu.matmul %21, %44, %cst_32 {dimension_numbers = #tpu.dot_dimension_numbers<[1], [0], [0], [1], [0, 0, 1, 1], [], []>} : vector<32x128xf32>, vector<128x32xf32>, vector<32x32xf32> -> vector<32x32xf32>
    %c8 = arith.constant 8 : index
    %c0_33 = arith.constant 0 : index
    %c0_34 = arith.constant 0 : index
    %46 = vector.load %arg2[%c8, %c0_33, %c0_34] : memref<9x128x32xf32, #tpu.memory_space<vmem>>, vector<1x128x32xf32>
    %47 = vector.shape_cast %46 : vector<1x128x32xf32> to vector<128x32xf32>
    %cst_35 = arith.constant dense<0.000000e+00> : vector<32x32xf32>
    %48 = tpu.matmul %21, %47, %cst_35 {dimension_numbers = #tpu.dot_dimension_numbers<[1], [0], [0], [1], [0, 0, 1, 1], [], []>} : vector<32x128xf32>, vector<128x32xf32>, vector<32x32xf32> -> vector<32x32xf32>
    %49 = tpu.concatenate %24, %27, %30, %33, %36, %39, %42, %45, %48 in 0 : vector<32x32xf32>, vector<32x32xf32>, vector<32x32xf32>, vector<32x32xf32>, vector<32x32xf32>, vector<32x32xf32>, vector<32x32xf32>, vector<32x32xf32>, vector<32x32xf32> -> vector<288x32xf32>
    %c0_36 = arith.constant 0 : index
    %c0_37 = arith.constant 0 : index
    %50 = vector.load %arg3[%c0_36, %c0_37] : memref<64x288xf32, #tpu.memory_space<vmem>>, vector<64x288xf32>
    %cst_38 = arith.constant dense<0.000000e+00> : vector<64x32xf32>
    %51 = tpu.matmul %50, %49, %cst_38 {dimension_numbers = #tpu.dot_dimension_numbers<[1], [0], [0], [1], [0, 0, 1, 1], [], []>} : vector<64x288xf32>, vector<288x32xf32>, vector<64x32xf32> -> vector<64x32xf32>
    %c0_39 = arith.constant 0 : index
    %c0_40 = arith.constant 0 : index
    %52 = vector.load %arg4[%c0_39, %c0_40] : memref<64x1xf32, #tpu.memory_space<vmem>>, vector<64x1xf32>
    %53 = vector.broadcast %52 : vector<64x1xf32> to vector<64x32xf32>
    %54 = arith.addf %51, %53 : vector<64x32xf32>
    %55 = math.tanh %54 : vector<64x32xf32>
    %c0_41 = arith.constant 0 : index
    %c0_42 = arith.constant 0 : index
    %c0_43 = arith.constant 0 : index
    %56 = vector.load %arg5[%c0_41, %c0_42, %c0_43] : memref<3x32x32xf32, #tpu.memory_space<vmem>>, vector<1x32x32xf32>
    %57 = vector.shape_cast %56 : vector<1x32x32xf32> to vector<32x32xf32>
    %cst_44 = arith.constant dense<0.000000e+00> : vector<64x32xf32>
    %58 = tpu.matmul %55, %57, %cst_44 {dimension_numbers = #tpu.dot_dimension_numbers<[1], [0], [0], [1], [0, 0, 1, 1], [], []>} : vector<64x32xf32>, vector<32x32xf32>, vector<64x32xf32> -> vector<64x32xf32>
    %c1_45 = arith.constant 1 : index
    %c0_46 = arith.constant 0 : index
    %c0_47 = arith.constant 0 : index
    %59 = vector.load %arg5[%c1_45, %c0_46, %c0_47] : memref<3x32x32xf32, #tpu.memory_space<vmem>>, vector<1x32x32xf32>
    %60 = vector.shape_cast %59 : vector<1x32x32xf32> to vector<32x32xf32>
    %cst_48 = arith.constant dense<0.000000e+00> : vector<64x32xf32>
    %61 = tpu.matmul %55, %60, %cst_48 {dimension_numbers = #tpu.dot_dimension_numbers<[1], [0], [0], [1], [0, 0, 1, 1], [], []>} : vector<64x32xf32>, vector<32x32xf32>, vector<64x32xf32> -> vector<64x32xf32>
    %c2_49 = arith.constant 2 : index
    %c0_50 = arith.constant 0 : index
    %c0_51 = arith.constant 0 : index
    %62 = vector.load %arg5[%c2_49, %c0_50, %c0_51] : memref<3x32x32xf32, #tpu.memory_space<vmem>>, vector<1x32x32xf32>
    %63 = vector.shape_cast %62 : vector<1x32x32xf32> to vector<32x32xf32>
    %cst_52 = arith.constant dense<0.000000e+00> : vector<64x32xf32>
    %64 = tpu.matmul %55, %63, %cst_52 {dimension_numbers = #tpu.dot_dimension_numbers<[1], [0], [0], [1], [0, 0, 1, 1], [], []>} : vector<64x32xf32>, vector<32x32xf32>, vector<64x32xf32> -> vector<64x32xf32>
    %65 = tpu.concatenate %55, %58, %61, %64 in 0 : vector<64x32xf32>, vector<64x32xf32>, vector<64x32xf32>, vector<64x32xf32> -> vector<256x32xf32>
    %c0_53 = arith.constant 0 : index
    %c0_54 = arith.constant 0 : index
    %66 = vector.load %arg6[%c0_53, %c0_54] : memref<128x256xf32, #tpu.memory_space<vmem>>, vector<128x256xf32>
    %cst_55 = arith.constant dense<0.000000e+00> : vector<128x32xf32>
    %67 = tpu.matmul %66, %65, %cst_55 {dimension_numbers = #tpu.dot_dimension_numbers<[1], [0], [0], [1], [0, 0, 1, 1], [], []>} : vector<128x256xf32>, vector<256x32xf32>, vector<128x32xf32> -> vector<128x32xf32>
    %68 = vector.extract_strided_slice %67 {offsets = [0, 0], sizes = [32, 32], strides = [1, 1]} : vector<128x32xf32> to vector<32x32xf32>
    %69 = vector.extract_strided_slice %67 {offsets = [32, 0], sizes = [32, 32], strides = [1, 1]} : vector<128x32xf32> to vector<32x32xf32>
    %70 = vector.extract_strided_slice %67 {offsets = [64, 0], sizes = [32, 32], strides = [1, 1]} : vector<128x32xf32> to vector<32x32xf32>
    %71 = vector.extract_strided_slice %67 {offsets = [96, 0], sizes = [32, 32], strides = [1, 1]} : vector<128x32xf32> to vector<32x32xf32>
    %72 = tpu.concatenate %68, %69, %70, %71 in 1 : vector<32x32xf32>, vector<32x32xf32>, vector<32x32xf32>, vector<32x32xf32> -> vector<32x128xf32>
    %cst_56 = arith.constant dense<0.000000e+00> : vector<32xf32>
    %73 = vector.multi_reduction <add>, %72, %cst_56 [1] : vector<32x128xf32> to vector<32xf32>
    %74 = vector.shape_cast %73 : vector<32xf32> to vector<32x1xf32>
    %cst_57 = arith.constant 1.280000e+02 : f32
    %75 = vector.broadcast %cst_57 : f32 to vector<32x1xf32>
    %76 = arith.divf %74, %75 : vector<32x1xf32>
    %77 = vector.broadcast %76 : vector<32x1xf32> to vector<32x128xf32>
    %78 = arith.subf %72, %77 : vector<32x128xf32>
    %79 = arith.mulf %78, %78 : vector<32x128xf32>
    %cst_58 = arith.constant dense<0.000000e+00> : vector<32xf32>
    %80 = vector.multi_reduction <add>, %79, %cst_58 [1] : vector<32x128xf32> to vector<32xf32>
    %81 = vector.shape_cast %80 : vector<32xf32> to vector<32x1xf32>
    %cst_59 = arith.constant 1.280000e+02 : f32
    %82 = vector.broadcast %cst_59 : f32 to vector<32x1xf32>
    %83 = arith.divf %81, %82 : vector<32x1xf32>
    %84 = vector.broadcast %76 : vector<32x1xf32> to vector<32x128xf32>
    %85 = arith.subf %72, %84 : vector<32x128xf32>
    %cst_60 = arith.constant 9.99999974E-6 : f32
    %86 = vector.broadcast %cst_60 : f32 to vector<32x1xf32>
    %87 = arith.addf %83, %86 : vector<32x1xf32>
    %88 = math.rsqrt %87 : vector<32x1xf32>
    %89 = vector.broadcast %88 : vector<32x1xf32> to vector<32x128xf32>
    %90 = arith.mulf %85, %89 : vector<32x128xf32>
    %91 = math.tanh %90 : vector<32x128xf32>
    %c0_61 = arith.constant 0 : index
    %c0_62 = arith.constant 0 : index
    %c0_63 = arith.constant 0 : index
    %92 = vector.load %arg7[%c0_61, %c0_62, %c0_63] : memref<4x128x128xf32, #tpu.memory_space<vmem>>, vector<1x128x128xf32>
    %93 = vector.shape_cast %92 : vector<1x128x128xf32> to vector<128x128xf32>
    %cst_64 = arith.constant dense<0.000000e+00> : vector<32x128xf32>
    %94 = tpu.matmul %91, %93, %cst_64 {dimension_numbers = #tpu.dot_dimension_numbers<[1], [0], [0], [1], [0, 0, 1, 1], [], []>} : vector<32x128xf32>, vector<128x128xf32>, vector<32x128xf32> -> vector<32x128xf32>
    %c1_65 = arith.constant 1 : index
    %c0_66 = arith.constant 0 : index
    %c0_67 = arith.constant 0 : index
    %95 = vector.load %arg7[%c1_65, %c0_66, %c0_67] : memref<4x128x128xf32, #tpu.memory_space<vmem>>, vector<1x128x128xf32>
    %96 = vector.shape_cast %95 : vector<1x128x128xf32> to vector<128x128xf32>
    %cst_68 = arith.constant dense<0.000000e+00> : vector<32x128xf32>
    %97 = tpu.matmul %91, %96, %cst_68 {dimension_numbers = #tpu.dot_dimension_numbers<[1], [0], [0], [1], [0, 0, 1, 1], [], []>} : vector<32x128xf32>, vector<128x128xf32>, vector<32x128xf32> -> vector<32x128xf32>
    %c2_69 = arith.constant 2 : index
    %c0_70 = arith.constant 0 : index
    %c0_71 = arith.constant 0 : index
    %98 = vector.load %arg7[%c2_69, %c0_70, %c0_71] : memref<4x128x128xf32, #tpu.memory_space<vmem>>, vector<1x128x128xf32>
    %99 = vector.shape_cast %98 : vector<1x128x128xf32> to vector<128x128xf32>
    %cst_72 = arith.constant dense<0.000000e+00> : vector<32x128xf32>
    %100 = tpu.matmul %91, %99, %cst_72 {dimension_numbers = #tpu.dot_dimension_numbers<[1], [0], [0], [1], [0, 0, 1, 1], [], []>} : vector<32x128xf32>, vector<128x128xf32>, vector<32x128xf32> -> vector<32x128xf32>
    %c3_73 = arith.constant 3 : index
    %c0_74 = arith.constant 0 : index
    %c0_75 = arith.constant 0 : index
    %101 = vector.load %arg7[%c3_73, %c0_74, %c0_75] : memref<4x128x128xf32, #tpu.memory_space<vmem>>, vector<1x128x128xf32>
    %102 = vector.shape_cast %101 : vector<1x128x128xf32> to vector<128x128xf32>
    %cst_76 = arith.constant dense<0.000000e+00> : vector<32x128xf32>
    %103 = tpu.matmul %91, %102, %cst_76 {dimension_numbers = #tpu.dot_dimension_numbers<[1], [0], [0], [1], [0, 0, 1, 1], [], []>} : vector<32x128xf32>, vector<128x128xf32>, vector<32x128xf32> -> vector<32x128xf32>
    %104 = tpu.concatenate %94, %97, %100, %103 in 0 : vector<32x128xf32>, vector<32x128xf32>, vector<32x128xf32>, vector<32x128xf32> -> vector<128x128xf32>
    %c0_77 = arith.constant 0 : index
    %c0_78 = arith.constant 0 : index
    %105 = vector.load %arg8[%c0_77, %c0_78] : memref<4x128xf32, #tpu.memory_space<vmem>>, vector<4x128xf32>
    %cst_79 = arith.constant dense<0.000000e+00> : vector<4x128xf32>
    %106 = tpu.matmul %105, %104, %cst_79 {dimension_numbers = #tpu.dot_dimension_numbers<[1], [0], [0], [1], [0, 0, 1, 1], [], []>} : vector<4x128xf32>, vector<128x128xf32>, vector<4x128xf32> -> vector<4x128xf32>
    %c0_80 = arith.constant 0 : index
    %c0_81 = arith.constant 0 : index
    %107 = vector.load %arg9[%c0_80, %c0_81] : memref<1x1xf32, #tpu.memory_space<vmem>>, vector<1x1xf32>
    %108 = vector.broadcast %107 : vector<1x1xf32> to vector<4x128xf32>
    %109 = arith.addf %106, %108 : vector<4x128xf32>
    %110 = math.tanh %109 : vector<4x128xf32>
    %c0_82 = arith.constant 0 : index
    %c0_83 = arith.constant 0 : index
    %111 = vector.load %arg10[%c0_82, %c0_83] : memref<4x128xf32, #tpu.memory_space<vmem>>, vector<4x128xf32>
    tpu.vector_store %arg10[%c0_82, %c0_83], %110 {strides = array<i32>} : memref<4x128xf32, #tpu.memory_space<vmem>>, vector<4x128xf32>,
    return
  }
}

</mosaic_0001>

<bundles_post_ra>
// kernel: autoencoder_forward.1
= control target key start
LH: loop header
LB: loop body
LE: loop exit
PB: predicated region body
PF: predicated region fallthrough
CT: control target
= control target key end

     0   :  { %vm56_vm0 = vcmask 1040384   ;;  %vm43_vm1 = vcmask 72704   ;;  %vm4470_vm2 = vmmov 1   ;;  %vm1183_vm4 = vcmask 261120   ;;  %s4473_s27 = smov 64   ;;  %s5632_s0 = inlined_call_operand.vmem [shape: f32[9,128], index: 0, kind: input, shape index: {}]   ;;  %s5633_s1 = inlined_call_operand.vmem [shape: f32[32,9], index: 1, kind: input, shape index: {}]   ;;  %s5634_s2 = inlined_call_operand.vmem [shape: f32[9,128,32], index: 2, kind: input, shape index: {}]   ;;  %s5635_s3 = inlined_call_operand.vmem [shape: f32[64,288], index: 3, kind: input, shape index: {}]   ;;  %s5636_s4 = inlined_call_operand.vmem [shape: f32[64,1], index: 4, kind: input, shape index: {}]   ;;  %s5637_s5 = inlined_call_operand.vmem [shape: f32[3,32,32], index: 5, kind: input, shape index: {}]   ;;  %s5638_s6 = inlined_call_operand.vmem [shape: f32[128,256], index: 6, kind: input, shape index: {}]   ;;  %s5639_s9 = inlined_call_operand.<no memory space> [shape: f32[1,1], index: 9, kind: input, shape index: {}]   ;;  %s5640_s7 = inlined_call_operand.vmem [shape: f32[4,128,128], index: 7, kind: input, shape index: {}]   ;;  %s5641_s8 = inlined_call_operand.vmem [shape: f32[4,128], index: 8, kind: input, shape index: {}]   ;;  %s5642_s10 = inlined_call_operand.vmem [shape: f32[4,128], index: 10, kind: output, shape index: {}]  }
   0x1   :  { %v41_v0 = vld [vmem:[%s5632_s0] sm:$0xff]  ;;  %v42_v1 = vld [vmem:[%s5632_s0 + $0x8] sm:$0x1]  ;;  %vm3869_vm3 = vmpackc.low %vm56_vm0, %vm4470_vm2  ;;  %vm2008_vm5 = vcmask 523264   ;;  %vm2013_vm6 = vcmask 785408   ;;  %vm4476_vm7 = vmmov 0  }
   0x2   :  { %v3868_v2 = vpack.c.bf16 %v42_v1, %v41_v0  ;;  %v37_v3 = vld [vmem:[%s5633_s1] sm:$0xff]  ;;  %v38_v4 = vld [vmem:[%s5633_s1 + $0x8] sm:$0xff]  ;;  %v39_v5 = vld [vmem:[%s5633_s1 + $0x10] sm:$0xff] }
   0x3   :  { %3253 = vmatprep.mubr.msk.f32.mxu0 %vm43_vm1, %v37_v3  ;;  %v40_v6 = vld [vmem:[%s5633_s1 + $0x18] sm:$0xff]  ;;  %v194_v11 = vld [vmem:[%s5634_s2] sm:$0xff]  ;;  %v195_v12 = vld [vmem:[%s5634_s2 + $0x8] sm:$0xff] }
   0x4   :  { %3870 = vmatprep.subr.msk.bf16.mxu0 %vm3869_vm3, %v3868_v2  ;;  %v2565_v13 = vld [vmem:[%s5634_s2 + $0x80] sm:$0xff]  ;;  %v3874_v14 = vpack.c.bf16 %v195_v12, %v194_v11  ;;  %v2566_v15 = vld [vmem:[%s5634_s2 + $0x88] sm:$0xff]  ;;  %v196_v33 = vld [vmem:[%s5634_s2 + $0x10] sm:$0xff] }
   0x5   :  { %3873 = vmatpush3.bf16.msk.msra.mxu0 %vm3869_vm3, %v3868_v2  ;;  %v3906_v16 = vpack.c.bf16 %v2566_v15, %v2565_v13  ;;  %v197_v34 = vld [vmem:[%s5634_s2 + $0x18] sm:$0xff]  ;;  %v2567_v35 = vld [vmem:[%s5634_s2 + $0x90] sm:$0xff]  ;;  %v198_v39 = vld [vmem:[%s5634_s2 + $0x20] sm:$0xff] }
   0x6   :  { %3875 = vmatprep.subr.bf16.mxu1 %v3874_v14  ;;  %v3878_v36 = vpack.c.bf16 %v197_v34, %v196_v33  ;;  %v2568_v37 = vld [vmem:[%s5634_s2 + $0x98] sm:$0xff]  ;;  %v199_v40 = vld [vmem:[%s5634_s2 + $0x28] sm:$0xff]  ;;  %v2569_v41 = vld [vmem:[%s5634_s2 + $0xa0] sm:$0xff] }
   0x7   :  { %3907 = vmatprep.subr.bf16.mxu0 %v3906_v16  ;;  %3877 = vmatpush3.bf16.msra.mxu1 %v3874_v14  ;;  %v3910_v38 = vpack.c.bf16 %v2568_v37, %v2567_v35  ;;  %v3882_v42 = vpack.c.bf16 %v199_v40, %v198_v39  ;;  %v2570_v43 = vld [vmem:[%s5634_s2 + $0xa8] sm:$0xff]  ;;  %v200_v45 = vld [vmem:[%s5634_s2 + $0x30] sm:$0xff]  ;;  %v201_v46 = vld [vmem:[%s5634_s2 + $0x38] sm:$0xff] }
   0x8   :  { %3254 = vmatmul.mubr.msk.f32.vlgmr.msra.gmra.mrb[0].mxu0 %vm43_vm1, %v38_v4  ;;  %3879 = vmatprep.subr.bf16.mxu1 %v3878_v36  ;;  %v3914_v44 = vpack.c.bf16 %v2570_v43, %v2569_v41  ;;  %v2571_v47 = vld [vmem:[%s5634_s2 + $0xb0] sm:$0xff]  ;;  %v3886_v48 = vpack.c.bf16 %v201_v46, %v200_v45  ;;  %v2572_v49 = vld [vmem:[%s5634_s2 + $0xb8] sm:$0xff]  ;;  %v202_v51 = vld [vmem:[%s5634_s2 + $0x40] sm:$0xff] }
   0x9   :  { %3256 = vmatprep.mubr.msk.f32.mxu0 %vm43_vm1, %v39_v5  ;;  %3909 = vmatpush3.bf16.msra.mxu0 %v3906_v16  ;;  %v3918_v50 = vpack.c.bf16 %v2572_v49, %v2571_v47  ;;  %v203_v52 = vld [vmem:[%s5634_s2 + $0x48] sm:$0xff]  ;;  %v2573_v53 = vld [vmem:[%s5634_s2 + $0xc0] sm:$0xff]  ;;  %v204_v57 = vld [vmem:[%s5634_s2 + $0x50] sm:$0xff] }
   0xa   :  { %3911 = vmatprep.subr.bf16.mxu0 %v3910_v38  ;;  %v3890_v54 = vpack.c.bf16 %v203_v52, %v202_v51  ;;  %v2574_v55 = vld [vmem:[%s5634_s2 + $0xc8] sm:$0xff]  ;;  %v205_v58 = vld [vmem:[%s5634_s2 + $0x58] sm:$0xff]  ;;  %v2575_v59 = vld [vmem:[%s5634_s2 + $0xd0] sm:$0xff] }
   0xb   :  { %3881 = vmatpush3.bf16.msra.mxu1 %v3878_v36  ;;  %v3922_v56 = vpack.c.bf16 %v2574_v55, %v2573_v53  ;;  %v3894_v60 = vpack.c.bf16 %v205_v58, %v204_v57  ;;  %v2576_v61 = vld [vmem:[%s5634_s2 + $0xd8] sm:$0xff]  ;;  %v206_v63 = vld [vmem:[%s5634_s2 + $0x60] sm:$0xff]  ;;  %v207_v0 = vld [vmem:[%s5634_s2 + $0x68] sm:$0xff] }
   0xc   :  { %3257 = vmatmul.mubr.msk.f32.gmra.mrb[2].mxu0 %vm43_vm1, %v40_v6  ;;  %3883 = vmatprep.subr.bf16.mxu1 %v3882_v42  ;;  %v3926_v62 = vpack.c.bf16 %v2576_v61, %v2575_v59  ;;  %v2577_v1 = vld [vmem:[%s5634_s2 + $0xe0] sm:$0xff]  ;;  %v3898_v2 = vpack.c.bf16 %v207_v0, %v206_v63  ;;  %v2578_v3 = vld [vmem:[%s5634_s2 + $0xe8] sm:$0xff]  ;;  %v208_v5 = vld [vmem:[%s5634_s2 + $0x70] sm:$0xff] }
   0xd   :  { %3913 = vmatpush3.bf16.msra.mxu0 %v3910_v38  ;;  %v3930_v4 = vpack.c.bf16 %v2578_v3, %v2577_v1  ;;  %v209_v6 = vld [vmem:[%s5634_s2 + $0x78] sm:$0xff]  ;;  %v2581_v11 = vld [vmem:[%s5634_s2 + $0x100] sm:$0xff]  ;;  %v2582_v12 = vld [vmem:[%s5634_s2 + $0x108] sm:$0xff] }
   0xe   :  { %3915 = vmatprep.subr.bf16.mxu0 %v3914_v44  ;;  %v2597_v13 = vld [vmem:[%s5634_s2 + $0x180] sm:$0xff]  ;;  %v3938_v14 = vpack.c.bf16 %v2582_v12, %v2581_v11  ;;  %v2598_v15 = vld [vmem:[%s5634_s2 + $0x188] sm:$0xff]  ;;  %v2587_v51 = vld [vmem:[%s5634_s2 + $0x130] sm:$0xff] }
   0xf   :  { %3885 = vmatpush3.bf16.msra.mxu1 %v3882_v42  ;;  %v3970_v16 = vpack.c.bf16 %v2598_v15, %v2597_v13  ;;  %v2585_v46 = vld [vmem:[%s5634_s2 + $0x120] sm:$0xff]  ;;  %v2586_v47 = vld [vmem:[%s5634_s2 + $0x128] sm:$0xff]  ;;  %v2603_v55 = vld [vmem:[%s5634_s2 + $0x1b0] sm:$0xff] }
  0x10   :  { %3887 = vmatprep.subr.bf16.mxu1 %v3886_v48  ;;  %v2602_v49 = vld [vmem:[%s5634_s2 + $0x1a8] sm:$0xff]  ;;  %v3946_v52 = vpack.c.bf16 %v2586_v47, %v2585_v46  ;;  %v2589_v59 = vld [vmem:[%s5634_s2 + $0x140] sm:$0xff]  ;;  %v2591_v1 = vld [vmem:[%s5634_s2 + $0x150] sm:$0xff] }
  0x11   :  { %3917 = vmatpush3.bf16.msra.mxu0 %v3914_v44  ;;  %v2605_v61 = vld [vmem:[%s5634_s2 + $0x1c0] sm:$0xff]  ;;  %v2607_v3 = vld [vmem:[%s5634_s2 + $0x1d0] sm:$0xff]  ;;  %v2622_v47 = vld [vmem:[%s5634_s2 + $0x248] sm:$0xff] }
  0x12   :  { %3919 = vmatprep.subr.bf16.mxu0 %v3918_v50  ;;  %v2595_v13 = vld [vmem:[%s5634_s2 + $0x170] sm:$0xff]  ;;  %v2621_v46 = vld [vmem:[%s5634_s2 + $0x240] sm:$0xff] }
  0x13   :  { %3889 = vmatpush3.bf16.msra.mxu1 %v3886_v48  ;;  %v2601_v48 = vld [vmem:[%s5634_s2 + $0x1a0] sm:$0xff]  ;;  %v2611_v15 = vld [vmem:[%s5634_s2 + $0x1f0] sm:$0xff] }
  0x14   :  { %3891 = vmatprep.subr.bf16.mxu1 %v3890_v54  ;;  %v3978_v53 = vpack.c.bf16 %v2602_v49, %v2601_v48  ;;  %v2637_v48 = vld [vmem:[%s5634_s2 + $0x2c0] sm:$0xff]  ;;  %v2638_v49 = vld [vmem:[%s5634_s2 + $0x2c8] sm:$0xff] }
  0x15   :  { %3921 = vmatpush3.bf16.msra.mxu0 %v3918_v50 }
  0x16   :  { %3923 = vmatprep.subr.bf16.mxu0 %v3922_v56 }
  0x17   :  { %3893 = vmatpush3.bf16.msra.mxu1 %v3890_v54  ;;  %v2588_v54 = vld [vmem:[%s5634_s2 + $0x138] sm:$0xff] }
  0x18   :  { %3895 = vmatprep.subr.bf16.mxu1 %v3894_v60  ;;  %v3950_v57 = vpack.c.bf16 %v2588_v54, %v2587_v51  ;;  %v4018_v51 = vpack.c.bf16 %v2622_v47, %v2621_v46  ;;  %v2624_v54 = vld [vmem:[%s5634_s2 + $0x258] sm:$0xff]  ;;  %v2657_v46 = vld [vmem:[%s5634_s2 + $0x360] sm:$0xff]  ;;  %v2658_v47 = vld [vmem:[%s5634_s2 + $0x368] sm:$0xff] }
  0x19   :  { %3925 = vmatpush3.bf16.msra.mxu0 %v3922_v56  ;;  %v2604_v56 = vld [vmem:[%s5634_s2 + $0x1b8] sm:$0xff] }
  0x1a   :  { %3927 = vmatprep.subr.bf16.mxu0 %v3926_v62  ;;  %v3982_v58 = vpack.c.bf16 %v2604_v56, %v2603_v55  ;;  %v2639_v55 = vld [vmem:[%s5634_s2 + $0x2d0] sm:$0xff]  ;;  %v2640_v56 = vld [vmem:[%s5634_s2 + $0x2d8] sm:$0xff] }
  0x1b   :  { %3897 = vmatpush3.bf16.msra.mxu1 %v3894_v60  ;;  %v2590_v60 = vld [vmem:[%s5634_s2 + $0x148] sm:$0xff] }
  0x1c   :  { %3899 = vmatprep.subr.bf16.mxu1 %v3898_v2  ;;  %v3954_v63 = vpack.c.bf16 %v2590_v60, %v2589_v59  ;;  %v2625_v59 = vld [vmem:[%s5634_s2 + $0x260] sm:$0xff]  ;;  %v2626_v60 = vld [vmem:[%s5634_s2 + $0x268] sm:$0xff] }
  0x1d   :  { %3929 = vmatpush3.bf16.msra.mxu0 %v3926_v62  ;;  %v2606_v62 = vld [vmem:[%s5634_s2 + $0x1c8] sm:$0xff] }
  0x1e   :  { %3931 = vmatprep.subr.bf16.mxu0 %v3930_v4  ;;  %v3986_v0 = vpack.c.bf16 %v2606_v62, %v2605_v61  ;;  %v2641_v61 = vld [vmem:[%s5634_s2 + $0x2e0] sm:$0xff]  ;;  %v2642_v62 = vld [vmem:[%s5634_s2 + $0x2e8] sm:$0xff] }
  0x1f   :  { %3901 = vmatpush3.bf16.msra.mxu1 %v3898_v2  ;;  %v2592_v2 = vld [vmem:[%s5634_s2 + $0x158] sm:$0xff] }
  0x21   :  { %3933 = vmatpush3.bf16.msra.mxu0 %v3930_v4  ;;  %v2608_v4 = vld [vmem:[%s5634_s2 + $0x1d8] sm:$0xff] }
  0xdb   :  { %v3255_v7 = vpop.f32.mrb[0].mxu0 }
  0xdc   :  { %v126_v8 = vpop.f32.mrb[1].mxu0 }
  0xdd   :  { %145 = vadd.xlane.f32.xlu0 %v126_v8 }
  0xdf   :  { %v3258_v9 = vpop.f32.mrb[2].mxu0 }
  0xe0   :  { %v136_v10 = vpop.f32.mrb[3].mxu0 }
  0xe1   :  { %147 = vadd.xlane.f32.xlu0 %v3255_v7  ;;  %149 = vadd.xlane.f32.xlu1 %v136_v10 }
  0xe5   :  { %151 = vadd.xlane.f32.xlu1 %v3258_v9 }
 0x16a   :  { %v146_v17 = vpop.xlane.xlu0 %145 }
 0x16b   :  { %v154_v18 = vmul.f32 0.0078125, %v146_v17 }
 0x16d   :  { %v4563_v19 = vsub.f32 %v126_v8, %v154_v18  ;;  %v3902_v8 = vpack.c.bf16 %v209_v6, %v208_v5  ;;  %v3958_v5 = vpack.c.bf16 %v2592_v2, %v2591_v1  ;;  %v3990_v6 = vpack.c.bf16 %v2608_v4, %v2607_v3  ;;  %v2627_v1 = vld [vmem:[%s5634_s2 + $0x270] sm:$0xff]  ;;  %v2628_v2 = vld [vmem:[%s5634_s2 + $0x278] sm:$0xff] }
 0x16e   :  { %v148_v20 = vpop.xlane.xlu0 %147  ;;  %v150_v21 = vpop.xlane.xlu1 %149  ;;  %v2643_v3 = vld [vmem:[%s5634_s2 + $0x2f0] sm:$0xff]  ;;  %v2644_v4 = vld [vmem:[%s5634_s2 + $0x2f8] sm:$0xff] }
 0x16f   :  { %v155_v22 = vmul.f32 0.0078125, %v148_v20  ;;  %v156_v23 = vmul.f32 0.0078125, %v150_v21  ;;  %v162_v24 = vmul.f32 %v4563_v19, %v4563_v19  ;;  %3903 = vmatprep.subr.bf16.mxu1 %v3902_v8 }
 0x170   :  { %3905 = vmatpush3.bf16.msra.mxu1 %v3902_v8  ;;  %v2594_v8 = vld [vmem:[%s5634_s2 + $0x168] sm:$0xff] }
 0x171   :  { %v4567_v25 = vsub.f32 %v3255_v7, %v155_v22  ;;  %v4569_v26 = vsub.f32 %v136_v10, %v156_v23  ;;  %166 = vadd.xlane.f32.xlu0 %v162_v24  ;;  %v2579_v7 = vld [vmem:[%s5634_s2 + $0xf0] sm:$0xff]  ;;  %3939 = vmatprep.subr.bf16.mxu1 %v3938_v14 }
 0x172   :  { %v152_v27 = vpop.xlane.xlu1 %151 }
 0x173   :  { %v157_v28 = vmul.f32 0.0078125, %v152_v27  ;;  %v163_v29 = vmul.f32 %v4567_v25, %v4567_v25  ;;  %v164_v30 = vmul.f32 %v4569_v26, %v4569_v26 }
 0x175   :  { %v4575_v31 = vsub.f32 %v3258_v9, %v157_v28  ;;  %168 = vadd.xlane.f32.xlu1 %v163_v29  ;;  %170 = vadd.xlane.f32.xlu0 %v164_v30  ;;  %v2580_v9 = vld [vmem:[%s5634_s2 + $0xf8] sm:$0xff] }
 0x176   :  { %v3934_v10 = vpack.c.bf16 %v2580_v9, %v2579_v7  ;;  %v2593_v7 = vld [vmem:[%s5634_s2 + $0x160] sm:$0xff] }
 0x177   :  { %v165_v32 = vmul.f32 %v4575_v31, %v4575_v31  ;;  %v2609_v9 = vld [vmem:[%s5634_s2 + $0x1e0] sm:$0xff]  ;;  %v3962_v11 = vpack.c.bf16 %v2594_v8, %v2593_v7  ;;  %v2646_v8 = vld [vmem:[%s5634_s2 + $0x308] sm:$0xff] }
 0x178   :  { %3935 = vmatprep.subr.bf16.mxu0 %v3934_v10  ;;  %v2645_v7 = vld [vmem:[%s5634_s2 + $0x300] sm:$0xff] }
 0x179   :  { %172 = vadd.xlane.f32.xlu1 %v165_v32  ;;  %3937 = vmatpush3.bf16.msra.mxu0 %v3934_v10  ;;  %v2610_v10 = vld [vmem:[%s5634_s2 + $0x1e8] sm:$0xff] }
 0x17a   :  { %3971 = vmatprep.subr.bf16.mxu0 %v3970_v16  ;;  %v3994_v12 = vpack.c.bf16 %v2610_v10, %v2609_v9  ;;  %v2661_v9 = vld [vmem:[%s5634_s2 + $0x380] sm:$0xff]  ;;  %v2662_v10 = vld [vmem:[%s5634_s2 + $0x388] sm:$0xff] }
 0x1fe   :  { %v167_v17 = vpop.xlane.xlu0 %166 }
 0x1ff   :  { %v174_v18 = vmul.f32 0.0078125, %v167_v17 }
 0x201   :  { %v178_v20 = vadd.f32 1e-05, %v174_v18 }
 0x202   :  { %v171_v21 = vpop.xlane.xlu0 %170  ;;  %v169_v22 = vpop.xlane.xlu1 %168 }
 0x203   :  { %4420 = vrsqrt.f32 %v178_v20  ;;  %v176_v23 = vmul.f32 0.0078125, %v171_v21  ;;  %v175_v24 = vmul.f32 0.0078125, %v169_v22  ;;  %v2613_v20 = vld [vmem:[%s5634_s2 + $0x200] sm:$0xff]  ;;  %v2614_v21 = vld [vmem:[%s5634_s2 + $0x208] sm:$0xff] }
 0x204   :  { %v2629_v22 = vld [vmem:[%s5634_s2 + $0x280] sm:$0xff] }
 0x205   :  { %v180_v27 = vadd.f32 1e-05, %v176_v23  ;;  %v179_v28 = vadd.f32 1e-05, %v175_v24  ;;  %v2630_v23 = vld [vmem:[%s5634_s2 + $0x288] sm:$0xff]  ;;  %v4002_v24 = vpack.c.bf16 %v2614_v21, %v2613_v20  ;;  %v2649_v20 = vld [vmem:[%s5634_s2 + $0x320] sm:$0xff] }
 0x206   :  { %v173_v29 = vpop.xlane.xlu1 %172  ;;  %v2650_v21 = vld [vmem:[%s5634_s2 + $0x328] sm:$0xff] }
 0x207   :  { %4422 = vrsqrt.f32 %v180_v27  ;;  %v177_v30 = vmul.f32 0.0078125, %v173_v29  ;;  %v4034_v27 = vpack.c.bf16 %v2630_v23, %v2629_v22  ;;  %v2616_v29 = vld [vmem:[%s5634_s2 + $0x218] sm:$0xff]  ;;  %v2665_v22 = vld [vmem:[%s5634_s2 + $0x3a0] sm:$0xff]  ;;  %v2666_v23 = vld [vmem:[%s5634_s2 + $0x3a8] sm:$0xff] }
 0x208   :  { %4424 = vrsqrt.f32 %v179_v28  ;;  %v2615_v28 = vld [vmem:[%s5634_s2 + $0x210] sm:$0xff] }
 0x209   :  { %v181_v32 = vadd.f32 1e-05, %v177_v30  ;;  %v2631_v30 = vld [vmem:[%s5634_s2 + $0x290] sm:$0xff] }
 0x20b   :  { %4426 = vrsqrt.f32 %v181_v32  ;;  %v2632_v32 = vld [vmem:[%s5634_s2 + $0x298] sm:$0xff] }
 0x20d   :  { %v4421_v33 = vpop.eup %4420 }
 0x20e   :  { %v186_v34 = vmul.f32 %v4421_v33, %v4563_v19  ;;  %v2583_v19 = vld [vmem:[%s5634_s2 + $0x110] sm:$0xff]  ;;  %v4006_v33 = vpack.c.bf16 %v2616_v29, %v2615_v28  ;;  %v2652_v29 = vld [vmem:[%s5634_s2 + $0x338] sm:$0xff] }
 0x20f   :  { %v2651_v28 = vld [vmem:[%s5634_s2 + $0x330] sm:$0xff] }
 0x210   :  { %4428 = vtanh.f32 %v186_v34  ;;  %v4038_v34 = vpack.c.bf16 %v2632_v32, %v2631_v30  ;;  %v2667_v30 = vld [vmem:[%s5634_s2 + $0x3b0] sm:$0xff]  ;;  %v2668_v32 = vld [vmem:[%s5634_s2 + $0x3b8] sm:$0xff] }
 0x211   :  { %v4423_v35 = vpop.eup %4422 }
 0x212   :  { %v4425_v36 = vpop.eup %4424  ;;  %v188_v37 = vmul.f32 %v4423_v35, %v4569_v26  ;;  %v2599_v26 = vld [vmem:[%s5634_s2 + $0x190] sm:$0xff]  ;;  %v2617_v35 = vld [vmem:[%s5634_s2 + $0x220] sm:$0xff] }
 0x213   :  { %v187_v38 = vmul.f32 %v4425_v36, %v4567_v25  ;;  %v2584_v25 = vld [vmem:[%s5634_s2 + $0x118] sm:$0xff]  ;;  %v2618_v36 = vld [vmem:[%s5634_s2 + $0x228] sm:$0xff] }
 0x214   :  { %4430 = vtanh.f32 %v188_v37  ;;  %v3942_v44 = vpack.c.bf16 %v2584_v25, %v2583_v19  ;;  %v2633_v37 = vld [vmem:[%s5634_s2 + $0x2a0] sm:$0xff]  ;;  %v2619_v19 = vld [vmem:[%s5634_s2 + $0x230] sm:$0xff]  ;;  %v2620_v25 = vld [vmem:[%s5634_s2 + $0x238] sm:$0xff] }
 0x215   :  { %v4427_v39 = vpop.eup %4426  ;;  %4432 = vtanh.f32 %v187_v38  ;;  %v2634_v38 = vld [vmem:[%s5634_s2 + $0x2a8] sm:$0xff] }
 0x216   :  { %v189_v40 = vmul.f32 %v4427_v39, %v4575_v31  ;;  %v2600_v31 = vld [vmem:[%s5634_s2 + $0x198] sm:$0xff]  ;;  %v4010_v39 = vpack.c.bf16 %v2618_v36, %v2617_v35  ;;  %v2653_v35 = vld [vmem:[%s5634_s2 + $0x340] sm:$0xff]  ;;  %v2654_v36 = vld [vmem:[%s5634_s2 + $0x348] sm:$0xff] }
 0x217   :  { %v3974_v45 = vpack.c.bf16 %v2600_v31, %v2599_v26  ;;  %v2635_v26 = vld [vmem:[%s5634_s2 + $0x2b0] sm:$0xff]  ;;  %v2636_v31 = vld [vmem:[%s5634_s2 + $0x2b8] sm:$0xff] }
 0x218   :  { %4434 = vtanh.f32 %v189_v40  ;;  %v4042_v40 = vpack.c.bf16 %v2634_v38, %v2633_v37  ;;  %v2669_v37 = vld [vmem:[%s5634_s2 + $0x3c0] sm:$0xff]  ;;  %v2670_v38 = vld [vmem:[%s5634_s2 + $0x3c8] sm:$0xff] }
 0x21a   :  { %v4679_v41 = vpop.eup %4428 }
 0x21b   :  { %3291 = vmatprep.mubr.f32.mxu1 %v4679_v41  ;;  %3329 = vmatprep.mubr.f32.mxu0 %v4679_v41 }
 0x21e   :  { %v4695_v42 = vpop.eup %4430 }
 0x21f   :  { %v4697_v43 = vpop.eup %4432 }
 0x220   :  { %3292 = vmatmul.mubr.f32.vlgmr.msra.gmra.mrb[0].mxu1 %v4697_v43  ;;  %3330 = vmatmul.mubr.f32.vlgmr.msra.gmra.mrb[4].mxu0 %v4697_v43 }
 0x221   :  { %3941 = vmatpush3.bf16.msra.mxu1 %v3938_v14  ;;  %3973 = vmatpush3.bf16.msra.mxu0 %v3970_v16  ;;  %v2596_v14 = vld [vmem:[%s5634_s2 + $0x178] sm:$0xff] }
 0x222   :  { %v4713_v50 = vpop.eup %4434  ;;  %3294 = vmatprep.mubr.f32.mxu1 %v4695_v42  ;;  %3332 = vmatprep.mubr.f32.mxu0 %v4695_v42  ;;  %v2612_v16 = vld [vmem:[%s5634_s2 + $0x1f8] sm:$0xff]  ;;  %v3966_v17 = vpack.c.bf16 %v2596_v14, %v2595_v13  ;;  %v2647_v13 = vld [vmem:[%s5634_s2 + $0x310] sm:$0xff] }
 0x223   :  { %3943 = vmatprep.subr.bf16.mxu1 %v3942_v44  ;;  %3975 = vmatprep.subr.bf16.mxu0 %v3974_v45  ;;  %v3998_v18 = vpack.c.bf16 %v2612_v16, %v2611_v15  ;;  %v2648_v14 = vld [vmem:[%s5634_s2 + $0x318] sm:$0xff]  ;;  %v2663_v15 = vld [vmem:[%s5634_s2 + $0x390] sm:$0xff] }
 0x224   :  { %3295 = vmatmul.mubr.f32.gmra.mrb[2].mxu1 %v4713_v50  ;;  %3333 = vmatmul.mubr.f32.gmra.mrb[6].mxu0 %v4713_v50  ;;  %v2664_v16 = vld [vmem:[%s5634_s2 + $0x398] sm:$0xff] }
 0x225   :  { %3945 = vmatpush3.bf16.msra.mxu1 %v3942_v44  ;;  %3977 = vmatpush3.bf16.msra.mxu0 %v3974_v45  ;;  %v4014_v44 = vpack.c.bf16 %v2620_v25, %v2619_v19  ;;  %v4046_v45 = vpack.c.bf16 %v2636_v31, %v2635_v26  ;;  %v2655_v19 = vld [vmem:[%s5634_s2 + $0x350] sm:$0xff]  ;;  %v2656_v25 = vld [vmem:[%s5634_s2 + $0x358] sm:$0xff] }
 0x226   :  { %3367 = vmatprep.mubr.f32.mxu1 %v4679_v41  ;;  %3405 = vmatprep.mubr.f32.mxu0 %v4679_v41  ;;  %v2671_v26 = vld [vmem:[%s5634_s2 + $0x3d0] sm:$0xff]  ;;  %v2672_v31 = vld [vmem:[%s5634_s2 + $0x3d8] sm:$0xff] }
 0x227   :  { %3947 = vmatprep.subr.bf16.mxu1 %v3946_v52  ;;  %3979 = vmatprep.subr.bf16.mxu0 %v3978_v53 }
 0x229   :  { %3949 = vmatpush3.bf16.msra.mxu1 %v3946_v52  ;;  %3981 = vmatpush3.bf16.msra.mxu0 %v3978_v53  ;;  %v4050_v52 = vpack.c.bf16 %v2638_v49, %v2637_v48  ;;  %v2623_v53 = vld [vmem:[%s5634_s2 + $0x250] sm:$0xff]  ;;  %v2673_v48 = vld [vmem:[%s5634_s2 + $0x3e0] sm:$0xff]  ;;  %v2674_v49 = vld [vmem:[%s5634_s2 + $0x3e8] sm:$0xff] }
 0x22a   :  { %3951 = vmatprep.subr.bf16.mxu1 %v3950_v57  ;;  %3983 = vmatprep.subr.bf16.mxu0 %v3982_v58 }
 0x22d   :  { %3953 = vmatpush3.bf16.msra.mxu1 %v3950_v57  ;;  %3985 = vmatpush3.bf16.msra.mxu0 %v3982_v58  ;;  %v4022_v57 = vpack.c.bf16 %v2624_v54, %v2623_v53  ;;  %v4054_v58 = vpack.c.bf16 %v2640_v56, %v2639_v55  ;;  %v2659_v53 = vld [vmem:[%s5634_s2 + $0x370] sm:$0xff]  ;;  %v2660_v54 = vld [vmem:[%s5634_s2 + $0x378] sm:$0xff] }
 0x22e   :  { %3955 = vmatprep.subr.bf16.mxu1 %v3954_v63  ;;  %3987 = vmatprep.subr.bf16.mxu0 %v3986_v0  ;;  %v2675_v55 = vld [vmem:[%s5634_s2 + $0x3f0] sm:$0xff]  ;;  %v2676_v56 = vld [vmem:[%s5634_s2 + $0x3f8] sm:$0xff] }
 0x231   :  { %3957 = vmatpush3.bf16.msra.mxu1 %v3954_v63  ;;  %3989 = vmatpush3.bf16.msra.mxu0 %v3986_v0  ;;  %v4026_v63 = vpack.c.bf16 %v2626_v60, %v2625_v59  ;;  %v4058_v0 = vpack.c.bf16 %v2642_v62, %v2641_v61  ;;  %v2677_v59 = vld [vmem:[%s5634_s2 + $0x400] sm:$0xff]  ;;  %v2678_v60 = vld [vmem:[%s5634_s2 + $0x408] sm:$0xff]  ;;  %v2679_v62 = vld [vmem:[%s5634_s2 + $0x410] sm:$0xff] }
 0x232   :  { %3959 = vmatprep.subr.bf16.mxu1 %v3958_v5  ;;  %3991 = vmatprep.subr.bf16.mxu0 %v3990_v6  ;;  %v4130_v61 = vpack.c.bf16 %v2678_v60, %v2677_v59 }
 0x235   :  { %3961 = vmatpush3.bf16.msra.mxu1 %v3958_v5  ;;  %3993 = vmatpush3.bf16.msra.mxu0 %v3990_v6  ;;  %v4030_v5 = vpack.c.bf16 %v2628_v2, %v2627_v1  ;;  %v4062_v6 = vpack.c.bf16 %v2644_v4, %v2643_v3  ;;  %v2681_v1 = vld [vmem:[%s5634_s2 + $0x420] sm:$0xff]  ;;  %v2682_v2 = vld [vmem:[%s5634_s2 + $0x428] sm:$0xff]  ;;  %v2683_v4 = vld [vmem:[%s5634_s2 + $0x430] sm:$0xff] }
 0x236   :  { %3963 = vmatprep.subr.bf16.mxu1 %v3962_v11  ;;  %3995 = vmatprep.subr.bf16.mxu0 %v3994_v12  ;;  %v4138_v3 = vpack.c.bf16 %v2682_v2, %v2681_v1 }
 0x239   :  { %3965 = vmatpush3.bf16.msra.mxu1 %v3962_v11  ;;  %3997 = vmatpush3.bf16.msra.mxu0 %v3994_v12  ;;  %v4066_v11 = vpack.c.bf16 %v2646_v8, %v2645_v7  ;;  %v4098_v12 = vpack.c.bf16 %v2662_v10, %v2661_v9  ;;  %v2685_v7 = vld [vmem:[%s5634_s2 + $0x440] sm:$0xff]  ;;  %v2686_v8 = vld [vmem:[%s5634_s2 + $0x448] sm:$0xff]  ;;  %v2687_v10 = vld [vmem:[%s5634_s2 + $0x450] sm:$0xff] }
 0x23a   :  { %3967 = vmatprep.subr.bf16.mxu1 %v3966_v17  ;;  %3999 = vmatprep.subr.bf16.mxu0 %v3998_v18  ;;  %v4146_v9 = vpack.c.bf16 %v2686_v8, %v2685_v7 }
 0x23d   :  { %3969 = vmatpush3.bf16.msra.mxu1 %v3966_v17  ;;  %4001 = vmatpush3.bf16.msra.mxu0 %v3998_v18  ;;  %v4070_v17 = vpack.c.bf16 %v2648_v14, %v2647_v13  ;;  %v4102_v18 = vpack.c.bf16 %v2664_v16, %v2663_v15  ;;  %v2690_v13 = vld [vmem:[%s5634_s2 + $0x468] sm:$0xff]  ;;  %v2691_v15 = vld [vmem:[%s5634_s2 + $0x470] sm:$0xff]  ;;  %v2692_v16 = vld [vmem:[%s5634_s2 + $0x478] sm:$0xff] }
 0x23e   :  { %4003 = vmatprep.subr.bf16.mxu1 %v4002_v24  ;;  %4035 = vmatprep.subr.bf16.mxu0 %v4034_v27 }
 0x240   :  { %3368 = vmatmul.mubr.f32.vlgmr.msra.gmra.mrb[4].mxu1 %v4697_v43  ;;  %3406 = vmatmul.mubr.f32.vlgmr.msra.gmra.mrb[8].mxu0 %v4697_v43 }
 0x241   :  { %3370 = vmatprep.mubr.f32.mxu1 %v4695_v42  ;;  %3408 = vmatprep.mubr.f32.mxu0 %v4695_v42 }
 0x242   :  { %4005 = vmatpush3.bf16.msra.mxu1 %v4002_v24  ;;  %4037 = vmatpush3.bf16.msra.mxu0 %v4034_v27  ;;  %v4074_v24 = vpack.c.bf16 %v2650_v21, %v2649_v20  ;;  %v4106_v27 = vpack.c.bf16 %v2666_v23, %v2665_v22 }
 0x243   :  { %4007 = vmatprep.subr.bf16.mxu1 %v4006_v33  ;;  %4039 = vmatprep.subr.bf16.mxu0 %v4038_v34 }
 0x244   :  { %3371 = vmatmul.mubr.f32.gmra.mrb[6].mxu1 %v4713_v50  ;;  %3409 = vmatmul.mubr.f32.gmra.mrb[10].mxu0 %v4713_v50 }
 0x245   :  { %3443 = vmatprep.mubr.f32.mxu1 %v4679_v41  ;;  %3481 = vmatprep.mubr.f32.mxu0 %v4679_v41 }
 0x246   :  { %4009 = vmatpush3.bf16.msra.mxu1 %v4006_v33  ;;  %4041 = vmatpush3.bf16.msra.mxu0 %v4038_v34  ;;  %v4078_v33 = vpack.c.bf16 %v2652_v29, %v2651_v28  ;;  %v4110_v34 = vpack.c.bf16 %v2668_v32, %v2667_v30 }
 0x247   :  { %4011 = vmatprep.subr.bf16.mxu1 %v4010_v39  ;;  %4043 = vmatprep.subr.bf16.mxu0 %v4042_v40 }
 0x24a   :  { %4013 = vmatpush3.bf16.msra.mxu1 %v4010_v39  ;;  %4045 = vmatpush3.bf16.msra.mxu0 %v4042_v40  ;;  %v4082_v39 = vpack.c.bf16 %v2654_v36, %v2653_v35  ;;  %v4114_v40 = vpack.c.bf16 %v2670_v38, %v2669_v37  ;;  %v1135_v35 = vld [vmem:[%s5636_s4] sm:$0xff]  ;;  %v1137_v36 = vld [vmem:[%s5636_s4 + $0x10] sm:$0xff] }
 0x24b   :  { %4015 = vmatprep.subr.bf16.mxu1 %v4014_v44  ;;  %4047 = vmatprep.subr.bf16.mxu0 %v4046_v45 }
 0x24e   :  { %4017 = vmatpush3.bf16.msra.mxu1 %v4014_v44  ;;  %4049 = vmatpush3.bf16.msra.mxu0 %v4046_v45  ;;  %v4086_v44 = vpack.c.bf16 %v2656_v25, %v2655_v19  ;;  %v4118_v45 = vpack.c.bf16 %v2672_v31, %v2671_v26  ;;  %v1138_v26 = vld [vmem:[%s5636_s4 + $0x18] sm:$0xff] }
 0x24f   :  { %4019 = vmatprep.subr.bf16.mxu1 %v4018_v51  ;;  %4051 = vmatprep.subr.bf16.mxu0 %v4050_v52 }
 0x252   :  { %4021 = vmatpush3.bf16.msra.mxu1 %v4018_v51  ;;  %4053 = vmatpush3.bf16.msra.mxu0 %v4050_v52  ;;  %v4090_v51 = vpack.c.bf16 %v2658_v47, %v2657_v46  ;;  %v4122_v52 = vpack.c.bf16 %v2674_v49, %v2673_v48  ;;  %v1139_v49 = vld [vmem:[%s5636_s4 + $0x20] sm:$0xff] }
 0x253   :  { %4023 = vmatprep.subr.bf16.mxu1 %v4022_v57  ;;  %4055 = vmatprep.subr.bf16.mxu0 %v4054_v58 }
 0x256   :  { %4025 = vmatpush3.bf16.msra.mxu1 %v4022_v57  ;;  %4057 = vmatpush3.bf16.msra.mxu0 %v4054_v58  ;;  %v4094_v57 = vpack.c.bf16 %v2660_v54, %v2659_v53  ;;  %v4126_v58 = vpack.c.bf16 %v2676_v56, %v2675_v55  ;;  %v1142_v53 = vld [vmem:[%s5636_s4 + $0x38] sm:$0xff] }
 0x257   :  { %4027 = vmatprep.subr.bf16.mxu1 %v4026_v63  ;;  %4059 = vmatprep.subr.bf16.mxu0 %v4058_v0 }
 0x25a   :  { %4029 = vmatpush3.bf16.msra.mxu1 %v4026_v63  ;;  %4061 = vmatpush3.bf16.msra.mxu0 %v4058_v0  ;;  %v2680_v63 = vld [vmem:[%s5634_s2 + $0x418] sm:$0xff] }
 0x25b   :  { %4031 = vmatprep.subr.bf16.mxu1 %v4030_v5  ;;  %4063 = vmatprep.subr.bf16.mxu0 %v4062_v6  ;;  %v4134_v0 = vpack.c.bf16 %v2680_v63, %v2679_v62 }
 0x25e   :  { %4033 = vmatpush3.bf16.msra.mxu1 %v4030_v5  ;;  %4065 = vmatpush3.bf16.msra.mxu0 %v4062_v6  ;;  %v2684_v5 = vld [vmem:[%s5634_s2 + $0x438] sm:$0xff] }
 0x25f   :  { %4067 = vmatprep.subr.bf16.mxu1 %v4066_v11  ;;  %4099 = vmatprep.subr.bf16.mxu0 %v4098_v12  ;;  %v4142_v6 = vpack.c.bf16 %v2684_v5, %v2683_v4 }
 0x261   :  { %3444 = vmatmul.mubr.f32.vlgmr.msra.gmra.mrb[8].mxu1 %v4697_v43  ;;  %3482 = vmatmul.mubr.f32.vlgmr.msra.gmra.mrb[12].mxu0 %v4697_v43 }
 0x262   :  { %3446 = vmatprep.mubr.f32.mxu1 %v4695_v42  ;;  %3484 = vmatprep.mubr.f32.mxu0 %v4695_v42 }
 0x263   :  { %4069 = vmatpush3.bf16.msra.mxu1 %v4066_v11  ;;  %4101 = vmatpush3.bf16.msra.mxu0 %v4098_v12  ;;  %v2689_v12 = vld [vmem:[%s5634_s2 + $0x460] sm:$0xff] }
 0x264   :  { %4071 = vmatprep.subr.bf16.mxu1 %v4070_v17  ;;  %4103 = vmatprep.subr.bf16.mxu0 %v4102_v18  ;;  %v4154_v14 = vpack.c.bf16 %v2690_v13, %v2689_v12  ;;  %v1111_v13 = vld [vmem:[%s5635_s3] sm:$0xff] }
 0x265   :  { %3447 = vmatmul.mubr.f32.gmra.mrb[10].mxu1 %v4713_v50  ;;  %3485 = vmatmul.mubr.f32.gmra.mrb[14].mxu0 %v4713_v50 }
 0x266   :  { %3519 = vmatprep.mubr.f32.mxu1 %v4679_v41  ;;  %3557 = vmatprep.mubr.f32.mxu0 %v4679_v41 }
 0x267   :  { %4073 = vmatpush3.bf16.msra.mxu1 %v4070_v17  ;;  %4105 = vmatpush3.bf16.msra.mxu0 %v4102_v18  ;;  %v4158_v17 = vpack.c.bf16 %v2692_v16, %v2691_v15  ;;  %v1112_v18 = vld [vmem:[%s5635_s3 + $0x8] sm:$0xff]  ;;  %v1114_v15 = vld [vmem:[%s5635_s3 + $0x18] sm:$0xff] }
 0x268   :  { %4075 = vmatprep.subr.bf16.mxu1 %v4074_v24  ;;  %4107 = vmatprep.subr.bf16.mxu0 %v4106_v27  ;;  %v1118_v16 = vld [vmem:[%s5635_s3 + $0x38] sm:$0xff] }
 0x26b   :  { %4077 = vmatpush3.bf16.msra.mxu1 %v4074_v24  ;;  %4109 = vmatpush3.bf16.msra.mxu0 %v4106_v27 }
 0x26c   :  { %4079 = vmatprep.subr.bf16.mxu1 %v4078_v33  ;;  %4111 = vmatprep.subr.bf16.mxu0 %v4110_v34 }
 0x26f   :  { %4081 = vmatpush3.bf16.msra.mxu1 %v4078_v33  ;;  %4113 = vmatpush3.bf16.msra.mxu0 %v4110_v34  ;;  %v4471_v33 = vmov 0   ;;  %v1136_v34 = vld [vmem:[%s5636_s4 + $0x8] sm:$0xff] }
 0x270   :  { %4083 = vmatprep.subr.bf16.mxu1 %v4082_v39  ;;  %4115 = vmatprep.subr.bf16.mxu0 %v4114_v40 }
 0x271   :  { %4419 = vset.pattern.permute.xlu1 %v4471_v33  ;;  %4418 = vset.pattern.permute.xlu0 %v4471_v33  ;;  %v1116_v33 = vld [vmem:[%s5635_s3 + $0x28] sm:$0xff] }
 0x272   :  { %1150 = vperm.xlu1 %4419, %v1136_v34   ;;  %1145 = vperm.xlu0 %4418, %v1135_v35   ;;  %v1133_v34 = vld [vmem:[%s5635_s3 + $0xb0] sm:$0xff]  ;;  %v1119_v35 = vld [vmem:[%s5635_s3 + $0x40] sm:$0xff] }
 0x273   :  { %4085 = vmatpush3.bf16.msra.mxu1 %v4082_v39  ;;  %4117 = vmatpush3.bf16.msra.mxu0 %v4114_v40 }
 0x274   :  { %4087 = vmatprep.subr.bf16.mxu1 %v4086_v44  ;;  %4119 = vmatprep.subr.bf16.mxu0 %v4118_v45 }
 0x276   :  { %1155 = vperm.xlu1 %4419, %v1137_v36   ;;  %v1132_v36 = vld [vmem:[%s5635_s3 + $0xa8] sm:$0xff] }
 0x277   :  { %4089 = vmatpush3.bf16.msra.mxu1 %v4086_v44  ;;  %4121 = vmatpush3.bf16.msra.mxu0 %v4118_v45 }
 0x278   :  { %4091 = vmatprep.subr.bf16.mxu1 %v4090_v51  ;;  %4123 = vmatprep.subr.bf16.mxu0 %v4122_v52 }
 0x27a   :  { %1160 = vperm.xlu1 %4419, %v1138_v26   ;;  %v1427_v26 = vld [vmem:[%s5637_s5 + $0x8] sm:$0xff] }
 0x27b   :  { %4093 = vmatpush3.bf16.msra.mxu1 %v4090_v51  ;;  %4125 = vmatpush3.bf16.msra.mxu0 %v4122_v52  ;;  %v1140_v51 = vld [vmem:[%s5636_s4 + $0x28] sm:$0xff]  ;;  %v1141_v52 = vld [vmem:[%s5636_s4 + $0x30] sm:$0xff] }
 0x27c   :  { %4095 = vmatprep.subr.bf16.mxu1 %v4094_v57  ;;  %4127 = vmatprep.subr.bf16.mxu0 %v4126_v58 }
 0x27e   :  { %1165 = vperm.xlu1 %4419, %v1139_v49  }
 0x27f   :  { %4097 = vmatpush3.bf16.msra.mxu1 %v4094_v57  ;;  %4129 = vmatpush3.bf16.msra.mxu0 %v4126_v58 }
 0x280   :  { %4131 = vmatprep.subr.bf16.mxu1 %v4130_v61 }
 0x282   :  { %3520 = vmatmul.mubr.f32.vlgmr.msra.gmra.mrb[12].mxu1 %v4697_v43  ;;  %3558 = vmatmul.mubr.f32.vlgmr.msra.gmra.mrb[16].mxu0 %v4697_v43 }
 0x283   :  { %3522 = vmatprep.mubr.f32.mxu1 %v4695_v42  ;;  %3560 = vmatprep.mubr.f32.mxu0 %v4695_v42 }
 0x284   :  { %4133 = vmatpush3.bf16.msra.mxu1 %v4130_v61  ;;  %1170 = vperm.xlu1 %4419, %v1140_v51  }
 0x285   :  { %4135 = vmatprep.subr.bf16.mxu1 %v4134_v0 }
 0x286   :  { %3523 = vmatmul.mubr.f32.gmra.mrb[14].mxu1 %v4713_v50  ;;  %3561 = vmatmul.mubr.f32.gmra.mrb[18].mxu0 %v4713_v50 }
 0x287   :  { %3595 = vmatprep.mubr.f32.mxu1 %v4679_v41  ;;  %v2688_v41 = vld [vmem:[%s5634_s2 + $0x458] sm:$0xff]  ;;  %1272 = vmatprep.mubr.f32.mxu0 %v1112_v18  ;;  %v1121_v18 = vld [vmem:[%s5635_s3 + $0x50] sm:$0xff]  ;;  %s4474_s2 = smov 96  }
 0x288   :  { %4137 = vmatpush3.bf16.msra.mxu1 %v4134_v0  ;;  %v4150_v11 = vpack.c.bf16 %v2688_v41, %v2687_v10  ;;  %1175 = vperm.xlu1 %4419, %v1141_v52  }
 0x289   :  { %4139 = vmatprep.subr.bf16.mxu1 %v4138_v3 }
 0x28c   :  { %4141 = vmatpush3.bf16.msra.mxu1 %v4138_v3  ;;  %1180 = vperm.xlu1 %4419, %v1142_v53  }
 0x28d   :  { %4143 = vmatprep.subr.bf16.mxu1 %v4142_v6 }
 0x290   :  { %4145 = vmatpush3.bf16.msra.mxu1 %v4142_v6 }
 0x291   :  { %4147 = vmatprep.subr.bf16.mxu1 %v4146_v9 }
 0x294   :  { %4149 = vmatpush3.bf16.msra.mxu1 %v4146_v9 }
 0x295   :  { %4151 = vmatprep.subr.bf16.mxu1 %v4150_v11 }
 0x298   :  { %4153 = vmatpush3.bf16.msra.mxu1 %v4150_v11 }
 0x299   :  { %4155 = vmatprep.subr.bf16.mxu1 %v4154_v14 }
 0x29c   :  { %4157 = vmatpush3.bf16.msra.mxu1 %v4154_v14  ;;  %v1115_v14 = vld [vmem:[%s5635_s3 + $0x20] sm:$0xff] }
 0x29d   :  { %4159 = vmatprep.subr.bf16.mxu1 %v4158_v17 }
 0x2a0   :  { %4161 = vmatpush3.bf16.msra.mxu1 %v4158_v17  ;;  %v1117_v17 = vld [vmem:[%s5635_s3 + $0x30] sm:$0xff] }
 0x2a3   :  { %3596 = vmatmul.mubr.f32.vlgmr.msra.gmra.mrb[16].mxu1 %v4697_v43 }
 0x2a4   :  { %3598 = vmatprep.mubr.f32.mxu1 %v4695_v42 }
 0x2a7   :  { %3599 = vmatmul.mubr.f32.gmra.mrb[18].mxu1 %v4713_v50  ;;  %v1113_v50 = vld [vmem:[%s5635_s3 + $0x10] sm:$0xff] }
 0x2a8   :  { %3609 = vmatprep.mubr.msk.f32.mxu1 %vm1183_vm4, %v1113_v50  ;;  %v1129_v50 = vld [vmem:[%s5635_s3 + $0x90] sm:$0xff] }
 0x2f1   :  { %v1151_v51 = vpop.permute.xlu1 %1150 }
 0x2f3   :  { %v3293_v20 = vpop.f32.mrb[0].mxu1  ;;  %v5050_v21 = vpop.f32.mrb[4].mxu0 }
 0x2f4   :  { %v276_v22 = vpop.f32.mrb[1].mxu1  ;;  %v378_v23 = vpop.f32.mrb[5].mxu0 }
 0x2f5   :  { %v4164_v24 = vpack.c.bf16 %v3293_v20, %v276_v22  ;;  %v4172_v27 = vpack.c.bf16 %v5050_v21, %v378_v23  ;;  %v1120_v20 = vld [vmem:[%s5635_s3 + $0x48] sm:$0xff]  ;;  %v1123_v23 = vld [vmem:[%s5635_s3 + $0x60] sm:$0xff] }
 0x2f6   :  { %v1124_v21 = vld [vmem:[%s5635_s3 + $0x68] sm:$0xff] }
 0x2f7   :  { %v3296_v28 = vpop.f32.mrb[2].mxu1  ;;  %v3334_v29 = vpop.f32.mrb[6].mxu0 }
 0x2f8   :  { %v286_v43 = vpop.f32.mrb[3].mxu1  ;;  %v388_v30 = vpop.f32.mrb[7].mxu0 }
 0x2f9   :  { %v4168_v42 = vpack.c.bf16 %v3296_v28, %v286_v43  ;;  %v4176_v32 = vpack.c.bf16 %v3334_v29, %v388_v30  ;;  %v1126_v43 = vld [vmem:[%s5635_s3 + $0x78] sm:$0xff] }
 0x313   :  { %v3369_v37 = vpop.f32.mrb[4].mxu1  ;;  %v3407_v38 = vpop.f32.mrb[8].mxu0 }
 0x314   :  { %v480_v39 = vpop.f32.mrb[5].mxu1  ;;  %v582_v40 = vpop.f32.mrb[9].mxu0 }
 0x315   :  { %v4180_v19 = vpack.c.bf16 %v3369_v37, %v480_v39  ;;  %v4188_v25 = vpack.c.bf16 %v3407_v38, %v582_v40  ;;  %v1122_v37 = vld [vmem:[%s5635_s3 + $0x58] sm:$0xff]  ;;  %v1125_v38 = vld [vmem:[%s5635_s3 + $0x70] sm:$0xff]  ;;  %v1128_v39 = vld [vmem:[%s5635_s3 + $0x88] sm:$0xff] }
 0x316   :  { %v1131_v40 = vld [vmem:[%s5635_s3 + $0xa0] sm:$0xff] }
 0x317   :  { %v3372_v31 = vpop.f32.mrb[6].mxu1  ;;  %v3410_v44 = vpop.f32.mrb[10].mxu0 }
 0x318   :  { %v490_v45 = vpop.f32.mrb[7].mxu1  ;;  %v592_v46 = vpop.f32.mrb[11].mxu0 }
 0x319   :  { %v4184_v47 = vpack.c.bf16 %v3372_v31, %v490_v45  ;;  %v4192_v48 = vpack.c.bf16 %v3410_v44, %v592_v46  ;;  %v1428_v44 = vld [vmem:[%s5637_s5 + $0x10] sm:$0xff]  ;;  %v1429_v45 = vld [vmem:[%s5637_s5 + $0x18] sm:$0xff] }
 0x31a   :  { %v4206_v46 = vpack.c.bf16 %v1429_v45, %v1428_v44 }
 0x334   :  { %v3445_v54 = vpop.f32.mrb[8].mxu1  ;;  %v3483_v55 = vpop.f32.mrb[12].mxu0 }
 0x335   :  { %v684_v56 = vpop.f32.mrb[9].mxu1  ;;  %v786_v57 = vpop.f32.mrb[13].mxu0 }
 0x336   :  { %v4162_v58 = vpack.c.bf16 %v3445_v54, %v684_v56  ;;  %v4170_v59 = vpack.c.bf16 %v3483_v55, %v786_v57  ;;  %v1156_v55 = vpop.permute.xlu1 %1155 }
 0x338   :  { %v3448_v60 = vpop.f32.mrb[10].mxu1  ;;  %v3486_v61 = vpop.f32.mrb[14].mxu0  ;;  %4163 = vmatprep.subr.bf16.mxu0 %v4162_v58 }
 0x339   :  { %v694_v62 = vpop.f32.mrb[11].mxu1  ;;  %v796_v63 = vpop.f32.mrb[15].mxu0  ;;  %4165 = vmatpush3.bf16.msra.mxu0 %v4164_v24 }
 0x33a   :  { %v4166_v0 = vpack.c.bf16 %v3448_v60, %v694_v62  ;;  %v4174_v1 = vpack.c.bf16 %v3486_v61, %v796_v63  ;;  %v1161_v61 = vpop.permute.xlu1 %1160 }
 0x33c   :  { %4167 = vmatprep.subr.bf16.mxu0 %v4166_v0 }
 0x33d   :  { %4169 = vmatpush3.bf16.msra.mxu0 %v4168_v42  ;;  %v1130_v42 = vld [vmem:[%s5635_s3 + $0x98] sm:$0xff] }
 0x33e   :  { %4171 = vmatprep.subr.bf16.mxu0 %v4170_v59 }
 0x341   :  { %4173 = vmatpush3.bf16.msra.mxu0 %v4172_v27  ;;  %v1127_v27 = vld [vmem:[%s5635_s3 + $0x80] sm:$0xff] }
 0x342   :  { %4175 = vmatprep.subr.bf16.mxu0 %v4174_v1 }
 0x345   :  { %4177 = vmatpush3.bf16.msra.mxu0 %v4176_v32 }
 0x355   :  { %v3521_v2 = vpop.f32.mrb[12].mxu1  ;;  %v3559_v3 = vpop.f32.mrb[16].mxu0 }
 0x356   :  { %v888_v4 = vpop.f32.mrb[13].mxu1  ;;  %v990_v5 = vpop.f32.mrb[17].mxu0 }
 0x357   :  { %v4178_v6 = vpack.c.bf16 %v3521_v2, %v888_v4  ;;  %v4186_v7 = vpack.c.bf16 %v3559_v3, %v990_v5  ;;  %v1166_v2 = vpop.permute.xlu1 %1165 }
 0x359   :  { %v3524_v8 = vpop.f32.mrb[14].mxu1  ;;  %v3562_v9 = vpop.f32.mrb[18].mxu0  ;;  %4179 = vmatprep.subr.bf16.mxu0 %v4178_v6 }
 0x35a   :  { %v898_v10 = vpop.f32.mrb[15].mxu1  ;;  %v1000_v41 = vpop.f32.mrb[19].mxu0  ;;  %4181 = vmatpush3.bf16.msra.mxu0 %v4180_v19  ;;  %v1134_v19 = vld [vmem:[%s5635_s3 + $0xb8] sm:$0xff] }
 0x35b   :  { %v4182_v11 = vpack.c.bf16 %v3524_v8, %v898_v10  ;;  %v4190_v12 = vpack.c.bf16 %v3562_v9, %v1000_v41  ;;  %v1171_v8 = vpop.permute.xlu1 %1170  ;;  %v1146_v9 = vpop.permute.xlu0 %1145 }
 0x35d   :  { %4183 = vmatprep.subr.bf16.mxu0 %v4182_v11 }
 0x35e   :  { %4185 = vmatpush3.bf16.msra.mxu0 %v4184_v47  ;;  %v2709_v47 = vld [vmem:[%s5637_s5 + $0x20] sm:$0xff] }
 0x35f   :  { %4187 = vmatprep.subr.bf16.mxu0 %v4186_v7 }
 0x362   :  { %4189 = vmatpush3.bf16.msra.mxu0 %v4188_v25  ;;  %v1426_v25 = vld [vmem:[%s5637_s5] sm:$0xff] }
 0x363   :  { %4191 = vmatprep.subr.bf16.mxu0 %v4190_v12  ;;  %v4202_v31 = vpack.c.bf16 %v1427_v26, %v1426_v25 }
 0x366   :  { %4193 = vmatpush3.bf16.msra.mxu0 %v4192_v48  ;;  %v2710_v48 = vld [vmem:[%s5637_s5 + $0x28] sm:$0xff] }
 0x367   :  { %v5172_v49 = vpack.c.bf16 %v2710_v48, %v2709_v47  ;;  %v2721_v47 = vld [vmem:[%s5637_s5 + $0x40] sm:$0xff]  ;;  %v2722_v48 = vld [vmem:[%s5637_s5 + $0x48] sm:$0xff] }
 0x369   :  { %1273 = vmatmul.mubr.f32.vlgmr.msra.gmra.mrb[20].mxu0 %v1111_v13 }
 0x36a   :  { %1277 = vmatprep.mubr.f32.mxu0 %v1115_v14 }
 0x36d   :  { %1278 = vmatmul.mubr.f32.gmra.mrb[22].mxu0 %v1114_v15 }
 0x36e   :  { %1282 = vmatprep.mubr.f32.mxu0 %v1118_v16 }
 0x371   :  { %1283 = vmatmul.mubr.f32.gmra.mrb[24].mxu0 %v1117_v17 }
 0x372   :  { %1287 = vmatprep.mubr.f32.mxu0 %v1121_v18 }
 0x375   :  { %1288 = vmatmul.mubr.f32.gmra.mrb[26].mxu0 %v1120_v20  ;;  %v1176_v20 = vpop.permute.xlu1 %1175 }
 0x376   :  { %v3597_v22 = vpop.f32.mrb[16].mxu1  ;;  %1292 = vmatprep.mubr.f32.mxu0 %v1124_v21 }
 0x377   :  { %v1092_v24 = vpop.f32.mrb[17].mxu1 }
 0x378   :  { %v4194_v28 = vpack.c.bf16 %v3597_v22, %v1092_v24 }
 0x379   :  { %1293 = vmatmul.mubr.f32.gmra.mrb[28].mxu0 %v1123_v23 }
 0x37a   :  { %v3600_v29 = vpop.f32.mrb[18].mxu1  ;;  %4195 = vmatprep.subr.bf16.mxu1 %v4194_v28  ;;  %1297 = vmatprep.mubr.f32.mxu0 %v1127_v27 }
 0x37b   :  { %v1102_v30 = vpop.f32.mrb[19].mxu1  ;;  %4197 = vmatpush3.bf16.msra.mxu1 %v4194_v28 }
 0x37c   :  { %v4198_v32 = vpack.c.bf16 %v3600_v29, %v1102_v30 }
 0x37d   :  { %1298 = vmatmul.mubr.f32.gmra.mrb[30].mxu0 %v1126_v43 }
 0x37e   :  { %4199 = vmatprep.subr.bf16.mxu1 %v4198_v32  ;;  %1302 = vmatprep.mubr.f32.mxu0 %v1130_v42 }
 0x37f   :  { %4201 = vmatpush3.bf16.msra.mxu1 %v4198_v32 }
 0x380   :  { %4203 = vmatprep.subr.bf16.mxu1 %v4202_v31 }
 0x381   :  { %1303 = vmatmul.mubr.f32.gmra.mrb[32].mxu0 %v1129_v50 }
 0x382   :  { %3610 = vmatmul.mubr.msk.f32.vlgmr.msra.gmra.mrb[20].mxu1 %vm1183_vm4, %v1116_v33  ;;  %1307 = vmatprep.mubr.f32.mxu0 %v1133_v34 }
 0x383   :  { %3612 = vmatprep.mubr.msk.f32.mxu1 %vm1183_vm4, %v1119_v35  ;;  %4205 = vmatpush3.bf16.msra.mxu1 %v4202_v31  ;;  %v1181_v35 = vpop.permute.xlu1 %1180 }
 0x384   :  { %4207 = vmatprep.subr.bf16.mxu1 %v4206_v46 }
 0x385   :  { %1308 = vmatmul.mubr.f32.gmra.mrb[34].mxu0 %v1132_v36 }
 0x386   :  { %3613 = vmatmul.mubr.msk.f32.gmra.mrb[22].mxu1 %vm1183_vm4, %v1122_v37 }
 0x387   :  { %3615 = vmatprep.mubr.msk.f32.mxu1 %vm1183_vm4, %v1125_v38  ;;  %4209 = vmatpush3.bf16.msra.mxu1 %v4206_v46  ;;  %v2711_v38 = vld [vmem:[%s5637_s5 + $0x30] sm:$0xff] }
 0x388   :  { %4211 = vmatprep.subr.bf16.mxu1 %v5172_v49 }
 0x38a   :  { %3616 = vmatmul.mubr.msk.f32.gmra.mrb[24].mxu1 %vm1183_vm4, %v1128_v39  ;;  %v2712_v39 = vld [vmem:[%s5637_s5 + $0x38] sm:$0xff] }
 0x38b   :  { %3618 = vmatprep.mubr.msk.f32.mxu1 %vm1183_vm4, %v1131_v40  ;;  %v4214_v46 = vpack.c.bf16 %v2712_v39, %v2711_v38  ;;  %v1782_v38 = vld [vmem:[%s5638_s6 + $0x18] sm:$0xff]  ;;  %v1781_v39 = vld [vmem:[%s5638_s6 + $0x10] sm:$0xff] }
 0x38e   :  { %3619 = vmatmul.mubr.msk.f32.gmra.mrb[26].mxu1 %vm1183_vm4, %v1134_v19 }
 0x43c   :  { %v3000_v52 = vpop.f32.mrb[20].mxu0 }
 0x43d   :  { %v3001_v53 = vpop.f32.mrb[21].mxu0 }
 0x43e   :  { %v3002_v54 = vadd.f32 %v3001_v53, %v3000_v52 }
 0x440   :  { %v3003_v56 = vpop.f32.mrb[22].mxu0  ;;  %v1275_v12 = vadd.f32 %v3002_v54, %v1146_v9  ;;  %v4218_v54 = vpack.c.bf16 %v2722_v48, %v2721_v47  ;;  %v1792_v47 = vld [vmem:[%s5638_s6 + $0x68] sm:$0xff]  ;;  %v1791_v48 = vld [vmem:[%s5638_s6 + $0x60] sm:$0xff] }
 0x441   :  { %v3004_v57 = vpop.f32.mrb[23].mxu0 }
 0x442   :  { %v3005_v58 = vadd.f32 %v3004_v57, %v3003_v56 }
 0x444   :  { %v3006_v59 = vpop.f32.mrb[24].mxu0  ;;  %v1280_v11 = vadd.f32 %v3005_v58, %v1151_v51 }
 0x445   :  { %v3007_v60 = vpop.f32.mrb[25].mxu0 }
 0x446   :  { %v3008_v62 = vadd.f32 %v3007_v60, %v3006_v59  ;;  %v2723_v60 = vld [vmem:[%s5637_s5 + $0x50] sm:$0xff] }
 0x448   :  { %v3009_v63 = vpop.f32.mrb[26].mxu0  ;;  %v1285_v27 = vadd.f32 %v3008_v62, %v1156_v55 }
 0x449   :  { %v3010_v0 = vpop.f32.mrb[27].mxu0 }
 0x44a   :  { %v3011_v1 = vadd.f32 %v3010_v0, %v3009_v63  ;;  %v1780_v0 = vld [vmem:[%s5638_s6 + $0x8] sm:$0xff] }
 0x44b   :  { %1875 = vmatprep.mubr.f32.mxu0 %v1780_v0  ;;  %v1808_v0 = vld [vmem:[%s5638_s6 + $0xe8] sm:$0xff] }
 0x44c   :  { %v3012_v3 = vpop.f32.mrb[28].mxu0  ;;  %v1290_v22 = vadd.f32 %v3011_v1, %v1161_v61  ;;  %v2724_v61 = vld [vmem:[%s5637_s5 + $0x58] sm:$0xff] }
 0x44d   :  { %v3013_v4 = vpop.f32.mrb[29].mxu0  ;;  %v4222_v63 = vpack.c.bf16 %v2724_v61, %v2723_v60  ;;  %v1804_v60 = vld [vmem:[%s5638_s6 + $0xc8] sm:$0xff]  ;;  %v1803_v61 = vld [vmem:[%s5638_s6 + $0xc0] sm:$0xff] }
 0x44e   :  { %v3014_v5 = vadd.f32 %v3013_v4, %v3012_v3 }
 0x450   :  { %v3015_v6 = vpop.f32.mrb[30].mxu0  ;;  %v1295_v50 = vadd.f32 %v3014_v5, %v1166_v2 }
 0x451   :  { %v3016_v7 = vpop.f32.mrb[31].mxu0 }
 0x452   :  { %v3017_v10 = vadd.f32 %v3016_v7, %v3015_v6 }
 0x454   :  { %v3018_v41 = vpop.f32.mrb[32].mxu0  ;;  %v1300_v42 = vadd.f32 %v3017_v10, %v1171_v8 }
 0x455   :  { %v3611_v13 = vpop.f32.mrb[20].mxu1  ;;  %v3019_v14 = vpop.f32.mrb[33].mxu0 }
 0x456   :  { %v1385_v15 = vadd.f32 %v3611_v13, %v1280_v11  ;;  %v3020_v16 = vadd.f32 %v3019_v14, %v3018_v41  ;;  %v1379_v17 = vpop.f32.mrb[21].mxu1 }
 0x457   :  { %v1380_v18 = vadd.f32 %v1379_v17, %v1275_v12 }
 0x458   :  { %4436 = vtanh.f32 %v1385_v15  ;;  %v3021_v21 = vpop.f32.mrb[34].mxu0  ;;  %v1305_v19 = vadd.f32 %v3020_v16, %v1176_v20 }
 0x459   :  { %4438 = vtanh.f32 %v1380_v18  ;;  %v3614_v23 = vpop.f32.mrb[22].mxu1  ;;  %v3022_v24 = vpop.f32.mrb[35].mxu0 }
 0x45a   :  { %v1395_v28 = vadd.f32 %v3614_v23, %v1290_v22  ;;  %v3023_v29 = vadd.f32 %v3022_v24, %v3021_v21  ;;  %v1389_v43 = vpop.f32.mrb[23].mxu1 }
 0x45b   :  { %v1390_v30 = vadd.f32 %v1389_v43, %v1285_v27 }
 0x45c   :  { %4440 = vtanh.f32 %v1395_v28  ;;  %v1310_v37 = vadd.f32 %v3023_v29, %v1181_v35 }
 0x45d   :  { %4442 = vtanh.f32 %v1390_v30  ;;  %v3617_v32 = vpop.f32.mrb[24].mxu1 }
 0x45e   :  { %v1405_v33 = vadd.f32 %v3617_v32, %v1300_v42  ;;  %v1399_v34 = vpop.f32.mrb[25].mxu1 }
 0x45f   :  { %v1400_v36 = vadd.f32 %v1399_v34, %v1295_v50 }
 0x460   :  { %4444 = vtanh.f32 %v1405_v33 }
 0x461   :  { %4446 = vtanh.f32 %v1400_v36  ;;  %v3620_v40 = vpop.f32.mrb[26].mxu1 }
 0x462   :  { %v5181_v25 = vpop.eup %4436  ;;  %v1415_v26 = vadd.f32 %v3620_v40, %v1310_v37  ;;  %v1409_v31 = vpop.f32.mrb[27].mxu1  ;;  %v1779_v37 = vld [vmem:[%s5638_s6] sm:$0xff]  ;;  %v1784_v40 = vld [vmem:[%s5638_s6 + $0x28] sm:$0xff] }
 0x463   :  { %v5183_v44 = vpop.eup %4438  ;;  %v1410_v45 = vadd.f32 %v1409_v31, %v1305_v19  ;;  %v1783_v19 = vld [vmem:[%s5638_s6 + $0x20] sm:$0xff]  ;;  %v1788_v31 = vld [vmem:[%s5638_s6 + $0x48] sm:$0xff] }
 0x464   :  { %4448 = vtanh.f32 %v1415_v26  ;;  %3629 = vmatprep.mubr.msk.f32.mxu1 %vm1183_vm4, %v5183_v44  ;;  %v4228_v51 = vpack.c.bf16 %v5181_v25, %v5183_v44  ;;  %v1785_v26 = vld [vmem:[%s5638_s6 + $0x30] sm:$0xff] }
 0x465   :  { %4450 = vtanh.f32 %v1410_v45  ;;  %3630 = vmatmul.mubr.msk.f32.vlgmr.msra.gmra.mrb[28].mxu1 %vm1183_vm4, %v5181_v25  ;;  %v1790_v45 = vld [vmem:[%s5638_s6 + $0x58] sm:$0xff] }
 0x466   :  { %v5197_v52 = vpop.eup %4440  ;;  %4213 = vmatpush3.bf16.msra.mxu1 %v5172_v49 }
 0x467   :  { %v5200_v53 = vpop.eup %4442  ;;  %4215 = vmatprep.subr.bf16.mxu1 %v4214_v46 }
 0x468   :  { %3632 = vmatprep.mubr.msk.f32.mxu1 %vm1183_vm4, %v5200_v53  ;;  %v4232_v55 = vpack.c.bf16 %v5197_v52, %v5200_v53 }
 0x469   :  { %3633 = vmatmul.mubr.msk.f32.gmra.mrb[30].mxu1 %vm1183_vm4, %v5197_v52 }
 0x46a   :  { %v5208_v56 = vpop.eup %4444  ;;  %4217 = vmatpush3.bf16.msra.mxu1 %v4214_v46  ;;  %v1789_v46 = vld [vmem:[%s5638_s6 + $0x50] sm:$0xff] }
 0x46b   :  { %v5210_v57 = vpop.eup %4446  ;;  %4219 = vmatprep.subr.bf16.mxu1 %v4218_v54 }
 0x46c   :  { %3635 = vmatprep.mubr.msk.f32.mxu1 %vm1183_vm4, %v5210_v57  ;;  %v4236_v49 = vpack.c.bf16 %v5208_v56, %v5210_v57 }
 0x46d   :  { %3636 = vmatmul.mubr.msk.f32.gmra.mrb[32].mxu1 %vm1183_vm4, %v5208_v56 }
 0x46e   :  { %v5218_v58 = vpop.eup %4448 }
 0x46f   :  { %v4451_v59 = vpop.eup %4450 }
 0x470   :  { %3638 = vmatprep.mubr.msk.f32.mxu1 %vm1183_vm4, %v4451_v59  ;;  %v4240_v62 = vpack.c.bf16 %v5218_v58, %v4451_v59 }
 0x471   :  { %3639 = vmatmul.mubr.msk.f32.gmra.mrb[34].mxu1 %vm1183_vm4, %v5218_v58 }
 0x472   :  { %3649 = vmatprep.mubr.msk.f32.mxu1 %vm1183_vm4, %v5183_v44 }
 0x475   :  { %3650 = vmatmul.mubr.msk.f32.vlgmr.msra.gmra.mrb[36].mxu1 %vm1183_vm4, %v5181_v25 }
 0x476   :  { %3652 = vmatprep.mubr.msk.f32.mxu1 %vm1183_vm4, %v5200_v53  ;;  %4221 = vmatpush3.bf16.msra.mxu1 %v4218_v54  ;;  %v1795_v54 = vld [vmem:[%s5638_s6 + $0x80] sm:$0xff] }
 0x477   :  { %4223 = vmatprep.subr.bf16.mxu1 %v4222_v63 }
 0x479   :  { %3653 = vmatmul.mubr.msk.f32.gmra.mrb[38].mxu1 %vm1183_vm4, %v5197_v52 }
 0x47a   :  { %3655 = vmatprep.mubr.msk.f32.mxu1 %vm1183_vm4, %v5210_v57  ;;  %4225 = vmatpush3.bf16.msra.mxu1 %v4222_v63  ;;  %v1805_v63 = vld [vmem:[%s5638_s6 + $0xd0] sm:$0xff] }
 0x47d   :  { %3656 = vmatmul.mubr.msk.f32.gmra.mrb[40].mxu1 %vm1183_vm4, %v5208_v56 }
 0x47e   :  { %3658 = vmatprep.mubr.msk.f32.mxu1 %vm1183_vm4, %v4451_v59 }
 0x481   :  { %3659 = vmatmul.mubr.msk.f32.gmra.mrb[42].mxu1 %vm1183_vm4, %v5218_v58 }
 0x482   :  { %3669 = vmatprep.mubr.msk.f32.mxu1 %vm1183_vm4, %v5183_v44  ;;  %v1787_v44 = vld [vmem:[%s5638_s6 + $0x40] sm:$0xff] }
 0x485   :  { %3670 = vmatmul.mubr.msk.f32.vlgmr.msra.gmra.mrb[44].mxu1 %vm1183_vm4, %v5181_v25  ;;  %v1786_v25 = vld [vmem:[%s5638_s6 + $0x38] sm:$0xff] }
 0x486   :  { %3672 = vmatprep.mubr.msk.f32.mxu1 %vm1183_vm4, %v5200_v53  ;;  %v1796_v53 = vld [vmem:[%s5638_s6 + $0x88] sm:$0xff] }
 0x489   :  { %3673 = vmatmul.mubr.msk.f32.gmra.mrb[46].mxu1 %vm1183_vm4, %v5197_v52  ;;  %v1793_v52 = vld [vmem:[%s5638_s6 + $0x70] sm:$0xff] }
 0x48a   :  { %3675 = vmatprep.mubr.msk.f32.mxu1 %vm1183_vm4, %v5210_v57  ;;  %v1800_v57 = vld [vmem:[%s5638_s6 + $0xa8] sm:$0xff] }
 0x48d   :  { %3676 = vmatmul.mubr.msk.f32.gmra.mrb[48].mxu1 %vm1183_vm4, %v5208_v56  ;;  %v1797_v56 = vld [vmem:[%s5638_s6 + $0x90] sm:$0xff] }
 0x48e   :  { %3678 = vmatprep.mubr.msk.f32.mxu1 %vm1183_vm4, %v4451_v59  ;;  %v1801_v59 = vld [vmem:[%s5638_s6 + $0xb0] sm:$0xff] }
 0x491   :  { %3679 = vmatmul.mubr.msk.f32.gmra.mrb[50].mxu1 %vm1183_vm4, %v5218_v58  ;;  %v1802_v58 = vld [vmem:[%s5638_s6 + $0xb8] sm:$0xff] }
 0x538   :  { %v3631_v1 = vpop.f32.mrb[28].mxu1 }
 0x539   :  { %v1520_v2 = vpop.f32.mrb[29].mxu1 }
 0x53a   :  { %v4244_v3 = vpack.c.bf16 %v3631_v1, %v1520_v2  ;;  %v1807_v1 = vld [vmem:[%s5638_s6 + $0xe0] sm:$0xff]  ;;  %v1810_v2 = vld [vmem:[%s5638_s6 + $0xf8] sm:$0xff] }
 0x53c   :  { %v3634_v4 = vpop.f32.mrb[30].mxu1 }
 0x53d   :  { %v1530_v5 = vpop.f32.mrb[31].mxu1 }
 0x53e   :  { %v4248_v6 = vpack.c.bf16 %v3634_v4, %v1530_v5 }
 0x540   :  { %v3637_v7 = vpop.f32.mrb[32].mxu1 }
 0x541   :  { %v1540_v8 = vpop.f32.mrb[33].mxu1 }
 0x542   :  { %v4252_v9 = vpack.c.bf16 %v3637_v7, %v1540_v8 }
 0x544   :  { %v3640_v10 = vpop.f32.mrb[34].mxu1 }
 0x545   :  { %v1550_v41 = vpop.f32.mrb[35].mxu1 }
 0x546   :  { %v4256_v11 = vpack.c.bf16 %v3640_v10, %v1550_v41 }
 0x548   :  { %v3651_v12 = vpop.f32.mrb[36].mxu1 }
 0x549   :  { %v1630_v13 = vpop.f32.mrb[37].mxu1 }
 0x54a   :  { %v4226_v14 = vpack.c.bf16 %v3651_v12, %v1630_v13 }
 0x54c   :  { %v3654_v15 = vpop.f32.mrb[38].mxu1  ;;  %4227 = vmatprep.subr.bf16.mxu0 %v4226_v14 }
 0x54d   :  { %v1640_v16 = vpop.f32.mrb[39].mxu1  ;;  %4229 = vmatpush3.bf16.msra.mxu0 %v4228_v51  ;;  %v1794_v51 = vld [vmem:[%s5638_s6 + $0x78] sm:$0xff] }
 0x54e   :  { %v4230_v17 = vpack.c.bf16 %v3654_v15, %v1640_v16 }
 0x550   :  { %v3657_v18 = vpop.f32.mrb[40].mxu1  ;;  %4231 = vmatprep.subr.bf16.mxu0 %v4230_v17 }
 0x551   :  { %v1650_v20 = vpop.f32.mrb[41].mxu1  ;;  %4233 = vmatpush3.bf16.msra.mxu0 %v4232_v55  ;;  %v1798_v55 = vld [vmem:[%s5638_s6 + $0x98] sm:$0xff] }
 0x552   :  { %v4234_v21 = vpack.c.bf16 %v3657_v18, %v1650_v20 }
 0x554   :  { %v3660_v22 = vpop.f32.mrb[42].mxu1  ;;  %4235 = vmatprep.subr.bf16.mxu0 %v4234_v21 }
 0x555   :  { %v1660_v23 = vpop.f32.mrb[43].mxu1  ;;  %4237 = vmatpush3.bf16.msra.mxu0 %v4236_v49  ;;  %v1799_v49 = vld [vmem:[%s5638_s6 + $0xa0] sm:$0xff] }
 0x556   :  { %v4238_v24 = vpack.c.bf16 %v3660_v22, %v1660_v23 }
 0x558   :  { %v3671_v27 = vpop.f32.mrb[44].mxu1  ;;  %4239 = vmatprep.subr.bf16.mxu0 %v4238_v24 }
 0x559   :  { %v1740_v28 = vpop.f32.mrb[45].mxu1  ;;  %4241 = vmatpush3.bf16.msra.mxu0 %v4240_v62  ;;  %v1806_v62 = vld [vmem:[%s5638_s6 + $0xd8] sm:$0xff] }
 0x55a   :  { %v4242_v29 = vpack.c.bf16 %v3671_v27, %v1740_v28 }
 0x55c   :  { %v3674_v43 = vpop.f32.mrb[46].mxu1  ;;  %4243 = vmatprep.subr.bf16.mxu0 %v4242_v29 }
 0x55d   :  { %v1750_v30 = vpop.f32.mrb[47].mxu1  ;;  %4245 = vmatpush3.bf16.msra.mxu0 %v4244_v3  ;;  %v1809_v3 = vld [vmem:[%s5638_s6 + $0xf0] sm:$0xff]  ;;  %s4472_s6 = smov 32  }
 0x55e   :  { %v4246_v42 = vpack.c.bf16 %v3674_v43, %v1750_v30 }
 0x560   :  { %v3677_v32 = vpop.f32.mrb[48].mxu1  ;;  %4247 = vmatprep.subr.bf16.mxu0 %v4246_v42 }
 0x561   :  { %v1760_v50 = vpop.f32.mrb[49].mxu1  ;;  %4249 = vmatpush3.bf16.msra.mxu0 %v4248_v6 }
 0x562   :  { %v4250_v33 = vpack.c.bf16 %v3677_v32, %v1760_v50 }
 0x564   :  { %v3680_v34 = vpop.f32.mrb[50].mxu1  ;;  %4251 = vmatprep.subr.bf16.mxu0 %v4250_v33 }
 0x565   :  { %v1770_v35 = vpop.f32.mrb[51].mxu1  ;;  %4253 = vmatpush3.bf16.msra.mxu0 %v4252_v9 }
 0x566   :  { %v4254_v36 = vpack.c.bf16 %v3680_v34, %v1770_v35 }
 0x568   :  { %4255 = vmatprep.subr.bf16.mxu0 %v4254_v36 }
 0x569   :  { %4257 = vmatpush3.bf16.msra.mxu0 %v4256_v11 }
 0x56c   :  { %1876 = vmatmul.mubr.f32.vlgmr.msra.gmra.mrb[36].mxu0 %v1779_v37 }
 0x56d   :  { %1880 = vmatprep.mubr.f32.mxu0 %v1782_v38 }
 0x570   :  { %1881 = vmatmul.mubr.f32.gmra.mrb[38].mxu0 %v1781_v39 }
 0x571   :  { %1885 = vmatprep.mubr.f32.mxu0 %v1784_v40 }
 0x574   :  { %1886 = vmatmul.mubr.f32.gmra.mrb[40].mxu0 %v1783_v19 }
 0x575   :  { %1890 = vmatprep.mubr.f32.mxu0 %v1786_v25 }
 0x578   :  { %1891 = vmatmul.mubr.f32.gmra.mrb[42].mxu0 %v1785_v26 }
 0x579   :  { %1895 = vmatprep.mubr.f32.mxu0 %v1788_v31 }
 0x57c   :  { %1896 = vmatmul.mubr.f32.gmra.mrb[44].mxu0 %v1787_v44 }
 0x57d   :  { %1900 = vmatprep.mubr.f32.mxu0 %v1790_v45 }
 0x580   :  { %1901 = vmatmul.mubr.f32.gmra.mrb[46].mxu0 %v1789_v46 }
 0x581   :  { %1905 = vmatprep.mubr.f32.mxu0 %v1792_v47 }
 0x584   :  { %1906 = vmatmul.mubr.f32.gmra.mrb[48].mxu0 %v1791_v48 }
 0x585   :  { %1910 = vmatprep.mubr.f32.mxu0 %v1794_v51 }
 0x588   :  { %1911 = vmatmul.mubr.f32.gmra.mrb[50].mxu0 %v1793_v52 }
 0x589   :  { %1915 = vmatprep.mubr.f32.mxu0 %v1796_v53 }
 0x58c   :  { %1916 = vmatmul.mubr.f32.gmra.mrb[52].mxu0 %v1795_v54 }
 0x58d   :  { %1920 = vmatprep.mubr.f32.mxu0 %v1798_v55 }
 0x590   :  { %1921 = vmatmul.mubr.f32.gmra.mrb[54].mxu0 %v1797_v56 }
 0x591   :  { %1925 = vmatprep.mubr.f32.mxu0 %v1800_v57 }
 0x594   :  { %1926 = vmatmul.mubr.f32.gmra.mrb[56].mxu0 %v1799_v49 }
 0x595   :  { %1930 = vmatprep.mubr.f32.mxu0 %v1802_v58 }
 0x598   :  { %1931 = vmatmul.mubr.f32.gmra.mrb[58].mxu0 %v1801_v59 }
 0x599   :  { %1935 = vmatprep.mubr.f32.mxu0 %v1804_v60 }
 0x59c   :  { %1936 = vmatmul.mubr.f32.gmra.mrb[60].mxu0 %v1803_v61 }
 0x59d   :  { %1940 = vmatprep.mubr.f32.mxu0 %v1806_v62 }
 0x5a0   :  { %1941 = vmatmul.mubr.f32.gmra.mrb[62].mxu0 %v1805_v63 }
 0x5a1   :  { %1945 = vmatprep.mubr.f32.mxu0 %v1808_v0 }
 0x5a4   :  { %1946 = vmatmul.mubr.f32.gmra.mrb[64].mxu0 %v1807_v1 }
 0x5a5   :  { %1950 = vmatprep.mubr.f32.mxu0 %v1810_v2 }
 0x5a8   :  { %1951 = vmatmul.mubr.f32.gmra.mrb[66].mxu0 %v1809_v3 }
 0x63f   :  { %v3104_v4 = vpop.f32.mrb[36].mxu0 }
 0x640   :  { %v3105_v5 = vpop.f32.mrb[37].mxu0 }
 0x641   :  { %v5359_v6 = vadd.f32 %v3105_v5, %v3104_v4 }
 0x643   :  { %v3107_v7 = vpop.f32.mrb[38].mxu0 }
 0x644   :  { %v3108_v8 = vpop.f32.mrb[39].mxu0 }
 0x645   :  { %v5361_v9 = vadd.f32 %v3108_v8, %v3107_v7 }
 0x647   :  { %v3110_v10 = vpop.f32.mrb[40].mxu0 }
 0x648   :  { %v3111_v41 = vpop.f32.mrb[41].mxu0 }
 0x649   :  { %v5363_v11 = vadd.f32 %v3111_v41, %v3110_v10 }
 0x64b   :  { %v3113_v12 = vpop.f32.mrb[42].mxu0 }
 0x64c   :  { %v3114_v13 = vpop.f32.mrb[43].mxu0 }
 0x64d   :  { %v5365_v14 = vadd.f32 %v3114_v13, %v3113_v12  ;;  %v2066_v12 = vld [vmem:[%s5640_s7] sm:$0xff]  ;;  %v2067_v13 = vld [vmem:[%s5640_s7 + $0x8] sm:$0xff] }
 0x64f   :  { %v3116_v15 = vpop.f32.mrb[44].mxu0 }
 0x650   :  { %v3117_v16 = vpop.f32.mrb[45].mxu0 }
 0x651   :  { %v3118_v17 = vadd.f32 %v3117_v16, %v3116_v15 }
 0x653   :  { %v3119_v18 = vpop.f32.mrb[46].mxu0  ;;  %1960 = vrot.lane.b32.xlu1 %v3118_v17, %s4472_s6 }
 0x654   :  { %v3120_v20 = vpop.f32.mrb[47].mxu0 }
 0x655   :  { %v3121_v21 = vadd.f32 %v3120_v20, %v3119_v18 }
 0x657   :  { %v3122_v22 = vpop.f32.mrb[48].mxu0  ;;  %1962 = vrot.lane.b32.xlu0 %v3121_v21, %s4472_s6 }
 0x658   :  { %v3123_v23 = vpop.f32.mrb[49].mxu0 }
 0x659   :  { %v3124_v24 = vadd.f32 %v3123_v23, %v3122_v22 }
 0x65b   :  { %v3125_v27 = vpop.f32.mrb[50].mxu0 }
 0x65c   :  { %v3126_v28 = vpop.f32.mrb[51].mxu0 }
 0x65d   :  { %v3127_v29 = vadd.f32 %v3126_v28, %v3125_v27 }
 0x65f   :  { %v3128_v43 = vpop.f32.mrb[52].mxu0 }
 0x660   :  { %v3129_v30 = vpop.f32.mrb[53].mxu0 }
 0x661   :  { %v3130_v42 = vadd.f32 %v3129_v30, %v3128_v43 }
 0x663   :  { %v3131_v32 = vpop.f32.mrb[54].mxu0  ;;  %1976 = vrot.lane.b32.xlu1 %v3130_v42, %s4473_s27  ;;  %v2749_v42 = vld [vmem:[%s5640_s7 + $0x100] sm:$0xff] }
 0x664   :  { %v3132_v50 = vpop.f32.mrb[55].mxu0 }
 0x665   :  { %v3133_v33 = vadd.f32 %v3132_v50, %v3131_v32  ;;  %v2750_v32 = vld [vmem:[%s5640_s7 + $0x108] sm:$0xff] }
 0x667   :  { %v3134_v34 = vpop.f32.mrb[56].mxu0  ;;  %1978 = vrot.lane.b32.xlu0 %v3133_v33, %s4473_s27  ;;  %v4322_v33 = vpack.c.bf16 %v2750_v32, %v2749_v42 }
 0x668   :  { %v3135_v35 = vpop.f32.mrb[57].mxu0 }
 0x669   :  { %v3136_v36 = vadd.f32 %v3135_v35, %v3134_v34  ;;  %4323 = vmatprep.subr.bf16.mxu0 %v4322_v33  ;;  %v2068_v35 = vld [vmem:[%s5640_s7 + $0x10] sm:$0xff] }
 0x66a   :  { %4325 = vmatpush3.bf16.msra.mxu0 %v4322_v33 }
 0x66b   :  { %v3137_v37 = vpop.f32.mrb[58].mxu0 }
 0x66c   :  { %v3138_v38 = vpop.f32.mrb[59].mxu0 }
 0x66d   :  { %v3139_v39 = vadd.f32 %v3138_v38, %v3137_v37  ;;  %v2751_v38 = vld [vmem:[%s5640_s7 + $0x110] sm:$0xff] }
 0x66f   :  { %v3140_v40 = vpop.f32.mrb[60].mxu0 }
 0x670   :  { %v3141_v19 = vpop.f32.mrb[61].mxu0 }
 0x671   :  { %v3142_v25 = vadd.f32 %v3141_v19, %v3140_v40  ;;  %v2070_v19 = vld [vmem:[%s5640_s7 + $0x20] sm:$0xff] }
 0x673   :  { %v3143_v26 = vpop.f32.mrb[62].mxu0  ;;  %1992 = vrot.lane.b32.xlu1 %v3142_v25, %s4474_s2  ;;  %v2071_v25 = vld [vmem:[%s5640_s7 + $0x28] sm:$0xff] }
 0x674   :  { %v3144_v31 = vpop.f32.mrb[63].mxu0 }
 0x675   :  { %v3145_v44 = vadd.f32 %v3144_v31, %v3143_v26  ;;  %v4266_v26 = vpack.c.bf16 %v2071_v25, %v2070_v19  ;;  %v2753_v31 = vld [vmem:[%s5640_s7 + $0x120] sm:$0xff] }
 0x677   :  { %1994 = vrot.lane.b32.xlu0 %v3145_v44, %s4474_s2  ;;  %1964 = vrot.lane.b32.xlu1 %v3124_v24, %s4472_s6  ;;  %v3146_v45 = vpop.f32.mrb[64].mxu0  ;;  %v2754_v44 = vld [vmem:[%s5640_s7 + $0x128] sm:$0xff] }
 0x678   :  { %v3147_v46 = vpop.f32.mrb[65].mxu0 }
 0x679   :  { %v3148_v47 = vadd.f32 %v3147_v46, %v3146_v45  ;;  %v4330_v45 = vpack.c.bf16 %v2754_v44, %v2753_v31  ;;  %v2072_v46 = vld [vmem:[%s5640_s7 + $0x30] sm:$0xff]  ;;  %v2738_v31 = vld [vmem:[%s5640_s7 + $0xa8] sm:$0xff] }
 0x67b   :  { %1966 = vrot.lane.b32.xlu0 %v3127_v29, %s4472_s6  ;;  %1980 = vrot.lane.b32.xlu1 %v3136_v36, %s4473_s27  ;;  %v3149_v48 = vpop.f32.mrb[66].mxu0  ;;  %v2069_v36 = vld [vmem:[%s5640_s7 + $0x18] sm:$0xff] }
 0x67c   :  { %v3150_v51 = vpop.f32.mrb[67].mxu0  ;;  %v4262_v37 = vpack.c.bf16 %v2069_v36, %v2068_v35 }
 0x67d   :  { %v3151_v52 = vadd.f32 %v3150_v51, %v3149_v48  ;;  %v2755_v51 = vld [vmem:[%s5640_s7 + $0x130] sm:$0xff] }
 0x67f   :  { %1982 = vrot.lane.b32.xlu0 %v3139_v39, %s4473_s27  ;;  %1996 = vrot.lane.b32.xlu1 %v3148_v47, %s4474_s2  ;;  %v2752_v39 = vld [vmem:[%s5640_s7 + $0x118] sm:$0xff] }
 0x680   :  { %v4326_v40 = vpack.c.bf16 %v2752_v39, %v2751_v38  ;;  %v2073_v47 = vld [vmem:[%s5640_s7 + $0x38] sm:$0xff] }
 0x681   :  { %v4270_v48 = vpack.c.bf16 %v2073_v47, %v2072_v46 }
 0x682   :  { %4327 = vmatprep.subr.bf16.mxu0 %v4326_v40 }
 0x683   :  { %1998 = vrot.lane.b32.xlu0 %v3151_v52, %s4474_s2  ;;  %4329 = vmatpush3.bf16.msra.mxu0 %v4326_v40  ;;  %v2756_v52 = vld [vmem:[%s5640_s7 + $0x138] sm:$0xff]  ;;  %v2735_v40 = vld [vmem:[%s5640_s7 + $0x90] sm:$0xff] }
 0x684   :  { %4331 = vmatprep.subr.bf16.mxu0 %v4330_v45 }
 0x687   :  { %4333 = vmatpush3.bf16.msra.mxu0 %v4330_v45  ;;  %v2740_v45 = vld [vmem:[%s5640_s7 + $0xb8] sm:$0xff] }
 0x6c5   :  { %v1961_v53 = vpop.permute.xlu1 %1960 }
 0x6c6   :  { %v2004_v56 = vsel %vm1183_vm4, %v5359_v6, %v1961_v53  ;;  %v4334_v53 = vpack.c.bf16 %v2756_v52, %v2755_v51  ;;  %v2742_v51 = vld [vmem:[%s5640_s7 + $0xc8] sm:$0xff] }
 0x6c8   :  { %4335 = vmatprep.subr.bf16.mxu0 %v4334_v53 }
 0x6c9   :  { %v1963_v54 = vpop.permute.xlu0 %1962  ;;  %4337 = vmatpush3.bf16.msra.mxu0 %v4334_v53 }
 0x6ca   :  { %v2005_v60 = vsel %vm1183_vm4, %v5361_v9, %v1963_v54  ;;  %v2074_v54 = vld [vmem:[%s5640_s7 + $0x40] sm:$0xff] }
 0x6d5   :  { %v1977_v55 = vpop.permute.xlu1 %1976 }
 0x6d6   :  { %v2009_v57 = vsel %vm2008_vm5, %v2004_v56, %v1977_v55  ;;  %v2075_v55 = vld [vmem:[%s5640_s7 + $0x48] sm:$0xff] }
 0x6d7   :  { %v4274_v56 = vpack.c.bf16 %v2075_v55, %v2074_v54  ;;  %v2743_v54 = vld [vmem:[%s5640_s7 + $0xd0] sm:$0xff]  ;;  %v2744_v55 = vld [vmem:[%s5640_s7 + $0xd8] sm:$0xff] }
 0x6d9   :  { %v1979_v49 = vpop.permute.xlu0 %1978 }
 0x6da   :  { %v2010_v61 = vsel %vm2008_vm5, %v2005_v60, %v1979_v49  ;;  %v2758_v49 = vld [vmem:[%s5640_s7 + $0x148] sm:$0xff]  ;;  %v2077_v60 = vld [vmem:[%s5640_s7 + $0x58] sm:$0xff] }
 0x6e5   :  { %v1993_v58 = vpop.permute.xlu1 %1992 }
 0x6e6   :  { %v2014_v59 = vsel %vm2013_vm6, %v2009_v57, %v1993_v58  ;;  %v2757_v57 = vld [vmem:[%s5640_s7 + $0x140] sm:$0xff] }
 0x6e7   :  { %2018 = vadd.xlane.f32.xlu1 %v2014_v59  ;;  %v4338_v58 = vpack.c.bf16 %v2758_v49, %v2757_v57  ;;  %v2745_v57 = vld [vmem:[%s5640_s7 + $0xe0] sm:$0xff]  ;;  %v2746_v49 = vld [vmem:[%s5640_s7 + $0xe8] sm:$0xff] }
 0x6e9   :  { %v1995_v62 = vpop.permute.xlu0 %1994  ;;  %v1965_v63 = vpop.permute.xlu1 %1964  ;;  %4339 = vmatprep.subr.bf16.mxu0 %v4338_v58 }
 0x6ea   :  { %v2015_v0 = vsel %vm2013_vm6, %v2010_v61, %v1995_v62  ;;  %v2006_v3 = vsel %vm1183_vm4, %v5363_v11, %v1965_v63  ;;  %v15_v11 = vstv %s5639_s9  ;;  %4341 = vmatpush3.bf16.msra.mxu0 %v4338_v58  ;;  %v2759_v63 = vld [vmem:[%s5640_s7 + $0x150] sm:$0xff]  ;;  %v4314_v58 = vpack.c.bf16 %v2746_v49, %v2745_v57 }
 0x6eb   :  { %2020 = vadd.xlane.f32.xlu0 %v2015_v0  ;;  %16 = vst [vmem:[#allocation2] sm:$0x1] %v15_v11  ;;  %v2764_v11 = vld [vmem:[%s5640_s7 + $0x178] sm:$0xff] }
 0x6ed   :  { %v1967_v1 = vpop.permute.xlu0 %1966  ;;  %v1981_v2 = vpop.permute.xlu1 %1980 }
 0x6ee   :  { %v2011_v4 = vsel %vm2008_vm5, %v2006_v3, %v1981_v2  ;;  %v2007_v8 = vsel %vm1183_vm4, %v5365_v14, %v1967_v1  ;;  %v4258_v14 = vpack.c.bf16 %v2067_v13, %v2066_v12  ;;  %v2078_v2 = vld [vmem:[%s5640_s7 + $0x60] sm:$0xff]  ;;  %v2079_v3 = vld [vmem:[%s5640_s7 + $0x68] sm:$0xff] }
 0x6ef   :  { %v2733_v13 = vld [vmem:[%s5640_s7 + $0x80] sm:$0xff] }
 0x6f0   :  { %4259 = vmatprep.subr.bf16.mxu1 %v4258_v14 }
 0x6f1   :  { %v1983_v5 = vpop.permute.xlu0 %1982  ;;  %v1997_v6 = vpop.permute.xlu1 %1996  ;;  %4261 = vmatpush3.bf16.msra.mxu1 %v4258_v14  ;;  %v2734_v14 = vld [vmem:[%s5640_s7 + $0x88] sm:$0xff] }
 0x6f2   :  { %v2016_v7 = vsel %vm2013_vm6, %v2011_v4, %v1997_v6  ;;  %v2012_v9 = vsel %vm2008_vm5, %v2007_v8, %v1983_v5  ;;  %4263 = vmatprep.subr.bf16.mxu1 %v4262_v37  ;;  %v2781_v61 = vld [vmem:[#allocation2] ss:$0 sm:$0xff]  ;;  %v4282_v4 = vpack.c.bf16 %v2079_v3, %v2078_v2  ;;  %v2762_v6 = vld [vmem:[%s5640_s7 + $0x168] sm:$0xff]  ;;  %v2080_v8 = vld [vmem:[%s5640_s7 + $0x70] sm:$0xff] }
 0x6f3   :  { %2022 = vadd.xlane.f32.xlu0 %v2016_v7  ;;  %v2761_v5 = vld [vmem:[%s5640_s7 + $0x160] sm:$0xff]  ;;  %v2768_v2 = vld [vmem:[%s5640_s7 + $0x198] sm:$0xff] }
 0x6f5   :  { %v1999_v10 = vpop.permute.xlu0 %1998  ;;  %4265 = vmatpush3.bf16.msra.mxu1 %v4262_v37 }
 0x6f6   :  { %v2017_v41 = vsel %vm2013_vm6, %v2012_v9, %v1999_v10  ;;  %4267 = vmatprep.subr.bf16.mxu1 %v4266_v26  ;;  %v2081_v9 = vld [vmem:[%s5640_s7 + $0x78] sm:$0xff] }
 0x6f7   :  { %2024 = vadd.xlane.f32.xlu1 %v2017_v41  ;;  %v4286_v10 = vpack.c.bf16 %v2081_v9, %v2080_v8  ;;  %v2772_v8 = vld [vmem:[%s5640_s7 + $0x1b8] sm:$0xff] }
 0x6f9   :  { %4269 = vmatpush3.bf16.msra.mxu1 %v4266_v26 }
 0x6fa   :  { %4271 = vmatprep.subr.bf16.mxu1 %v4270_v48 }
 0x6fd   :  { %4273 = vmatpush3.bf16.msra.mxu1 %v4270_v48  ;;  %v2741_v48 = vld [vmem:[%s5640_s7 + $0xc0] sm:$0xff] }
 0x6fe   :  { %4275 = vmatprep.subr.bf16.mxu1 %v4274_v56  ;;  %v4306_v52 = vpack.c.bf16 %v2742_v51, %v2741_v48 }
 0x701   :  { %4277 = vmatpush3.bf16.msra.mxu1 %v4274_v56  ;;  %v4310_v56 = vpack.c.bf16 %v2744_v55, %v2743_v54 }
 0x774   :  { %v2019_v15 = vpop.xlane.xlu1 %2018 }
 0x775   :  { %v2026_v16 = vmul.f32 0.0078125, %v2019_v15  ;;  %v4290_v15 = vpack.c.bf16 %v2734_v14, %v2733_v13  ;;  %v2776_v13 = vld [vmem:[%s5640_s7 + $0x1d8] sm:$0xff] }
 0x777   :  { %v5396_v17 = vsub.f32 %v2014_v59, %v2026_v16  ;;  %v2076_v59 = vld [vmem:[%s5640_s7 + $0x50] sm:$0xff] }
 0x778   :  { %v2021_v18 = vpop.xlane.xlu0 %2020  ;;  %v4278_v62 = vpack.c.bf16 %v2077_v60, %v2076_v59  ;;  %v2747_v59 = vld [vmem:[%s5640_s7 + $0xf0] sm:$0xff]  ;;  %v2748_v60 = vld [vmem:[%s5640_s7 + $0xf8] sm:$0xff] }
 0x779   :  { %v2027_v20 = vmul.f32 0.0078125, %v2021_v18  ;;  %v2034_v21 = vmul.f32 %v5396_v17, %v5396_v17 }
 0x77a   :  { %4279 = vmatprep.subr.bf16.mxu1 %v4278_v62 }
 0x77b   :  { %v5400_v22 = vsub.f32 %v2015_v0, %v2027_v20  ;;  %2038 = vadd.xlane.f32.xlu0 %v2034_v21  ;;  %v2760_v0 = vld [vmem:[%s5640_s7 + $0x158] sm:$0xff]  ;;  %4281 = vmatpush3.bf16.msra.mxu1 %v4278_v62  ;;  %v2765_v62 = vld [vmem:[%s5640_s7 + $0x180] sm:$0xff] }
 0x77c   :  { %v4342_v1 = vpack.c.bf16 %v2760_v0, %v2759_v63  ;;  %4283 = vmatprep.subr.bf16.mxu1 %v4282_v4  ;;  %v2766_v63 = vld [vmem:[%s5640_s7 + $0x188] sm:$0xff] }
 0x77d   :  { %v2035_v23 = vmul.f32 %v5400_v22, %v5400_v22  ;;  %v4354_v0 = vpack.c.bf16 %v2766_v63, %v2765_v62 }
 0x77e   :  { %4343 = vmatprep.subr.bf16.mxu0 %v4342_v1 }
 0x77f   :  { %2040 = vadd.xlane.f32.xlu1 %v2035_v23  ;;  %4345 = vmatpush3.bf16.msra.mxu0 %v4342_v1  ;;  %v2767_v1 = vld [vmem:[%s5640_s7 + $0x190] sm:$0xff] }
 0x780   :  { %v2023_v24 = vpop.xlane.xlu0 %2022  ;;  %4285 = vmatpush3.bf16.msra.mxu1 %v4282_v4  ;;  %v4358_v3 = vpack.c.bf16 %v2768_v2, %v2767_v1  ;;  %v2769_v4 = vld [vmem:[%s5640_s7 + $0x1a0] sm:$0xff] }
 0x781   :  { %v2028_v27 = vmul.f32 0.0078125, %v2023_v24  ;;  %4287 = vmatprep.subr.bf16.mxu1 %v4286_v10 }
 0x783   :  { %v5404_v28 = vsub.f32 %v2016_v7, %v2028_v27  ;;  %v4346_v7 = vpack.c.bf16 %v2762_v6, %v2761_v5  ;;  %v2770_v5 = vld [vmem:[%s5640_s7 + $0x1a8] sm:$0xff] }
 0x784   :  { %v2025_v29 = vpop.xlane.xlu1 %2024  ;;  %4289 = vmatpush3.bf16.msra.mxu1 %v4286_v10  ;;  %v4362_v6 = vpack.c.bf16 %v2770_v5, %v2769_v4  ;;  %v2773_v10 = vld [vmem:[%s5640_s7 + $0x1c0] sm:$0xff] }
 0x785   :  { %v2029_v43 = vmul.f32 0.0078125, %v2025_v29  ;;  %v2036_v30 = vmul.f32 %v5404_v28, %v5404_v28  ;;  %4347 = vmatprep.subr.bf16.mxu0 %v4346_v7  ;;  %4291 = vmatprep.subr.bf16.mxu1 %v4290_v15 }
 0x786   :  { %4349 = vmatpush3.bf16.msra.mxu0 %v4346_v7  ;;  %v2771_v7 = vld [vmem:[%s5640_s7 + $0x1b0] sm:$0xff] }
 0x787   :  { %v5414_v50 = vsub.f32 %v2017_v41, %v2029_v43  ;;  %2042 = vadd.xlane.f32.xlu0 %v2036_v30  ;;  %v2763_v41 = vld [vmem:[%s5640_s7 + $0x170] sm:$0xff]  ;;  %v4366_v9 = vpack.c.bf16 %v2772_v8, %v2771_v7 }
 0x788   :  { %v4350_v12 = vpack.c.bf16 %v2764_v11, %v2763_v41  ;;  %v2774_v41 = vld [vmem:[%s5640_s7 + $0x1c8] sm:$0xff] }
 0x789   :  { %v2037_v34 = vmul.f32 %v5414_v50, %v5414_v50  ;;  %v4370_v11 = vpack.c.bf16 %v2774_v41, %v2773_v10 }
 0x78a   :  { %4351 = vmatprep.subr.bf16.mxu0 %v4350_v12 }
 0x78b   :  { %2044 = vadd.xlane.f32.xlu1 %v2037_v34  ;;  %4353 = vmatpush3.bf16.msra.mxu0 %v4350_v12  ;;  %v2775_v12 = vld [vmem:[%s5640_s7 + $0x1d0] sm:$0xff] }
 0x78c   :  { %v4374_v14 = vpack.c.bf16 %v2776_v13, %v2775_v12 }
 0x79d   :  { %2481 = vperm.xlu0 %4418, %v2781_v61   ;;  %v4318_v61 = vpack.c.bf16 %v2748_v60, %v2747_v59 }
 0x808   :  { %v2039_v16 = vpop.xlane.xlu0 %2038 }
 0x809   :  { %v2046_v18 = vmul.f32 0.0078125, %v2039_v16  ;;  %v2778_v16 = vld [vmem:[%s5640_s7 + $0x1e8] sm:$0xff] }
 0x80b   :  { %v2050_v20 = vadd.f32 1e-05, %v2046_v18 }
 0x80c   :  { %v2041_v21 = vpop.xlane.xlu1 %2040 }
 0x80d   :  { %4452 = vrsqrt.f32 %v2050_v20  ;;  %v2047_v23 = vmul.f32 0.0078125, %v2041_v21  ;;  %v2779_v20 = vld [vmem:[%s5640_s7 + $0x1f0] sm:$0xff]  ;;  %v2780_v21 = vld [vmem:[%s5640_s7 + $0x1f8] sm:$0xff] }
 0x80f   :  { %v2051_v24 = vadd.f32 1e-05, %v2047_v23  ;;  %v4382_v23 = vpack.c.bf16 %v2780_v21, %v2779_v20 }
 0x811   :  { %4454 = vrsqrt.f32 %v2051_v24  ;;  %v4475_v24 = vmov 0.0|0.0  }
 0x812   :  { %4386 = vmatprep.subr.bf16.mxu0 %v4475_v24 }
 0x814   :  { %v2043_v27 = vpop.xlane.xlu0 %2042 }
 0x815   :  { %v2048_v29 = vmul.f32 0.0078125, %v2043_v27  ;;  %v4477_v27 = vmov 0.0  }
 0x817   :  { %v4453_v43 = vpop.eup %4452  ;;  %v2052_v30 = vadd.f32 1e-05, %v2048_v29 }
 0x818   :  { %v2058_v42 = vmul.f32 %v4453_v43, %v5396_v17  ;;  %v2045_v32 = vpop.xlane.xlu1 %2044  ;;  %v2736_v17 = vld [vmem:[%s5640_s7 + $0x98] sm:$0xff] }
 0x819   :  { %4456 = vrsqrt.f32 %v2052_v30  ;;  %v2049_v33 = vmul.f32 0.0078125, %v2045_v32  ;;  %v4294_v19 = vpack.c.bf16 %v2736_v17, %v2735_v40 }
 0x81a   :  { %4458 = vtanh.f32 %v2058_v42 }
 0x81b   :  { %v4455_v34 = vpop.eup %4454  ;;  %v2053_v35 = vadd.f32 1e-05, %v2049_v33 }
 0x81c   :  { %v2059_v36 = vmul.f32 %v4455_v34, %v5400_v22  ;;  %v2482_v48 = vpop.permute.xlu0 %2481 }
 0x81d   :  { %4460 = vrsqrt.f32 %v2053_v35 }
 0x81e   :  { %4462 = vtanh.f32 %v2059_v36 }
 0x823   :  { %v4457_v37 = vpop.eup %4456 }
 0x824   :  { %v5510_v38 = vpop.eup %4458  ;;  %v2060_v39 = vmul.f32 %v4457_v37, %v5404_v28  ;;  %v2737_v28 = vld [vmem:[%s5640_s7 + $0xa0] sm:$0xff] }
 0x825   :  { %3713 = vmatprep.mubr.f32.mxu1 %v5510_v38  ;;  %3789 = vmatprep.mubr.f32.mxu0 %v5510_v38  ;;  %v4298_v44 = vpack.c.bf16 %v2738_v31, %v2737_v28 }
 0x826   :  { %4464 = vtanh.f32 %v2060_v39 }
 0x827   :  { %v4461_v22 = vpop.eup %4460 }
 0x828   :  { %v5521_v25 = vpop.eup %4462  ;;  %v2061_v26 = vmul.f32 %v4461_v22, %v5414_v50  ;;  %v2739_v50 = vld [vmem:[%s5640_s7 + $0xb0] sm:$0xff] }
 0x829   :  { %3714 = vmatmul.mubr.f32.vlgmr.msra.gmra.mrb[52].mxu1 %v5521_v25  ;;  %3790 = vmatmul.mubr.f32.vlgmr.msra.gmra.mrb[68].mxu0 %v5521_v25  ;;  %v4302_v46 = vpack.c.bf16 %v2740_v45, %v2739_v50 }
 0x82a   :  { %4466 = vtanh.f32 %v2061_v26  ;;  %4293 = vmatpush3.bf16.msra.mxu1 %v4290_v15  ;;  %v2777_v15 = vld [vmem:[%s5640_s7 + $0x1e0] sm:$0xff] }
 0x82b   :  { %4295 = vmatprep.subr.bf16.mxu1 %v4294_v19  ;;  %v4378_v18 = vpack.c.bf16 %v2778_v16, %v2777_v15 }
 0x82e   :  { %4297 = vmatpush3.bf16.msra.mxu1 %v4294_v19 }
 0x82f   :  { %4299 = vmatprep.subr.bf16.mxu1 %v4298_v44 }
 0x830   :  { %v5538_v47 = vpop.eup %4464 }
 0x831   :  { %3716 = vmatprep.mubr.f32.mxu1 %v5538_v47  ;;  %3792 = vmatprep.mubr.f32.mxu0 %v5538_v47 }
 0x832   :  { %4301 = vmatpush3.bf16.msra.mxu1 %v4298_v44 }
 0x833   :  { %4303 = vmatprep.subr.bf16.mxu1 %v4302_v46 }
 0x834   :  { %v5548_v53 = vpop.eup %4466 }
 0x835   :  { %3717 = vmatmul.mubr.f32.gmra.mrb[54].mxu1 %v5548_v53  ;;  %3793 = vmatmul.mubr.f32.gmra.mrb[70].mxu0 %v5548_v53 }
 0x836   :  { %4305 = vmatpush3.bf16.msra.mxu1 %v4302_v46  ;;  %3751 = vmatprep.mubr.f32.mxu1 %v5510_v38 }
 0x837   :  { %4307 = vmatprep.subr.bf16.mxu1 %v4306_v52  ;;  %3865 = vmatprep.mubr.msk.f32.mxu0 %vm4476_vm7, %v4477_v27 }
 0x83a   :  { %4309 = vmatpush3.bf16.msra.mxu1 %v4306_v52 }
 0x83b   :  { %4311 = vmatprep.subr.bf16.mxu1 %v4310_v56 }
 0x83e   :  { %4313 = vmatpush3.bf16.msra.mxu1 %v4310_v56 }
 0x83f   :  { %4315 = vmatprep.subr.bf16.mxu1 %v4314_v58 }
 0x842   :  { %4317 = vmatpush3.bf16.msra.mxu1 %v4314_v58 }
 0x843   :  { %4319 = vmatprep.subr.bf16.mxu1 %v4318_v61 }
 0x846   :  { %4321 = vmatpush3.bf16.msra.mxu1 %v4318_v61 }
 0x847   :  { %4355 = vmatprep.subr.bf16.mxu1 %v4354_v0 }
 0x849   :  { %3752 = vmatmul.mubr.f32.vlgmr.msra.gmra.mrb[56].mxu1 %v5521_v25 }
 0x84a   :  { %3754 = vmatprep.mubr.f32.mxu1 %v5538_v47  ;;  %4357 = vmatpush3.bf16.msra.mxu1 %v4354_v0 }
 0x84b   :  { %4359 = vmatprep.subr.bf16.mxu1 %v4358_v3 }
 0x84d   :  { %3755 = vmatmul.mubr.f32.gmra.mrb[58].mxu1 %v5548_v53 }
 0x84e   :  { %4361 = vmatpush3.bf16.msra.mxu1 %v4358_v3  ;;  %3827 = vmatprep.mubr.f32.mxu1 %v5510_v38 }
 0x84f   :  { %4363 = vmatprep.subr.bf16.mxu1 %v4362_v6 }
 0x852   :  { %4365 = vmatpush3.bf16.msra.mxu1 %v4362_v6 }
 0x853   :  { %4367 = vmatprep.subr.bf16.mxu1 %v4366_v9 }
 0x856   :  { %4369 = vmatpush3.bf16.msra.mxu1 %v4366_v9 }
 0x857   :  { %4371 = vmatprep.subr.bf16.mxu1 %v4370_v11 }
 0x85a   :  { %4373 = vmatpush3.bf16.msra.mxu1 %v4370_v11 }
 0x85b   :  { %4375 = vmatprep.subr.bf16.mxu1 %v4374_v14 }
 0x85e   :  { %4377 = vmatpush3.bf16.msra.mxu1 %v4374_v14 }
 0x85f   :  { %4379 = vmatprep.subr.bf16.mxu1 %v4378_v18 }
 0x862   :  { %4381 = vmatpush3.bf16.msra.mxu1 %v4378_v18 }
 0x863   :  { %4383 = vmatprep.subr.bf16.mxu1 %v4382_v23 }
 0x866   :  { %4385 = vmatpush3.bf16.msra.mxu1 %v4382_v23 }
 0x869   :  { %3828 = vmatmul.mubr.f32.vlgmr.msra.gmra.mrb[60].mxu1 %v5521_v25 }
 0x86a   :  { %3830 = vmatprep.mubr.f32.mxu1 %v5538_v47  ;;  %v2473_v47 = vld [vmem:[%s5641_s8] sm:$0xf] }
 0x86d   :  { %3831 = vmatmul.mubr.f32.gmra.mrb[62].mxu1 %v5548_v53 }
 0x8fc   :  { %v3715_v29 = vpop.f32.mrb[52].mxu1  ;;  %v3791_v43 = vpop.f32.mrb[68].mxu0 }
 0x8fd   :  { %v2148_v30 = vpop.f32.mrb[53].mxu1  ;;  %v2352_v42 = vpop.f32.mrb[69].mxu0 }
 0x8fe   :  { %v4387_v32 = vpack.c.bf16 %v3715_v29, %v2148_v30  ;;  %v4399_v33 = vpack.c.bf16 %v3791_v43, %v2352_v42 }
 0x900   :  { %4388 = vmatpush3.bf16.msra.mxu0 %v4387_v32 }
 0x901   :  { %4389 = vmatprep.subr.bf16.mxu0 %v4475_v24 }
 0x908   :  { %v3718_v34 = vpop.f32.mrb[54].mxu1  ;;  %v3794_v35 = vpop.f32.mrb[70].mxu0 }
 0x909   :  { %v2158_v36 = vpop.f32.mrb[55].mxu1  ;;  %v2362_v37 = vpop.f32.mrb[71].mxu0 }
 0x90a   :  { %v4390_v38 = vpack.c.bf16 %v3718_v34, %v2158_v36  ;;  %v4402_v39 = vpack.c.bf16 %v3794_v35, %v2362_v37 }
 0x90c   :  { %4391 = vmatpush3.bf16.msra.mxu0 %v4390_v38 }
 0x90d   :  { %4392 = vmatprep.subr.bf16.mxu0 %v4475_v24 }
 0x91c   :  { %v3753_v40 = vpop.f32.mrb[56].mxu1 }
 0x91d   :  { %v2250_v17 = vpop.f32.mrb[57].mxu1 }
 0x91e   :  { %v4393_v22 = vpack.c.bf16 %v3753_v40, %v2250_v17 }
 0x920   :  { %v3756_v19 = vpop.f32.mrb[58].mxu1  ;;  %4394 = vmatpush3.bf16.msra.mxu0 %v4393_v22 }
 0x921   :  { %v2260_v25 = vpop.f32.mrb[59].mxu1  ;;  %4395 = vmatprep.subr.bf16.mxu0 %v4475_v24 }
 0x922   :  { %v4396_v26 = vpack.c.bf16 %v3756_v19, %v2260_v25 }
 0x924   :  { %4397 = vmatpush3.bf16.msra.mxu0 %v4396_v26 }
 0x925   :  { %4398 = vmatprep.subr.bf16.mxu0 %v4475_v24 }
 0x928   :  { %4400 = vmatpush3.bf16.msra.mxu0 %v4399_v33 }
 0x929   :  { %4401 = vmatprep.subr.bf16.mxu0 %v4475_v24 }
 0x92c   :  { %4403 = vmatpush3.bf16.msra.mxu0 %v4402_v39 }
 0x92d   :  { %4404 = vmatprep.subr.bf16.mxu0 %v4475_v24 }
 0x93c   :  { %v3829_v28 = vpop.f32.mrb[60].mxu1 }
 0x93d   :  { %v2454_v31 = vpop.f32.mrb[61].mxu1 }
 0x93e   :  { %v4405_v44 = vpack.c.bf16 %v3829_v28, %v2454_v31 }
 0x940   :  { %v3832_v50 = vpop.f32.mrb[62].mxu1  ;;  %4406 = vmatpush3.bf16.msra.mxu0 %v4405_v44 }
 0x941   :  { %v2464_v45 = vpop.f32.mrb[63].mxu1  ;;  %4407 = vmatprep.subr.bf16.mxu0 %v4475_v24 }
 0x942   :  { %v4408_v46 = vpack.c.bf16 %v3832_v50, %v2464_v45 }
 0x944   :  { %4409 = vmatpush3.bf16.msra.mxu0 %v4408_v46 }
 0x947   :  { %3866 = vmatmul.mubr.f32.vlgmr.msra.gmra.mrb[72].mxu0 %v2473_v47 }
 0xa1a   :  { %v2550_v51 = vpop.f32.mrb[72].mxu0 }
 0xa1b   :  { %v2551_v52 = vadd.f32 %v2550_v51, %v2482_v48  ;;  %v3867_v53 = vpop.f32.mrb[73].mxu0 }
 0xa1d   :  { %4468 = vtanh.f32 %v2551_v52 }
 0xa27   :  { %v4469_v54 = vpop.eup %4468 }
 0xa28   :  { %2555 = vst [vmem:[%s5642_s10] sm:$0xf] %v4469_v54 }

</bundles_post_ra>
